<compile_context>
chip_gen: v5e
topology: v5e:2x2
jax: 0.10.0
libtpu: 0.0.40
codegen_flags: <defaults>
</compile_context>

<pallas_src>
import jax
import jax.numpy as jnp
from jax.experimental import pallas as pl
from jax.experimental.pallas import tpu as pltpu


def _transpose_kernel(x_ref, o_ref):
    # x_ref: (ts, th) VMEM tile; o_ref: (th, ts) VMEM tile. In-VMEM XLU
    # transpose; the rest of the permutation is layout plumbing via the
    # swapped block indices in the out_spec index_map.
    o_ref[...] = x_ref[...].T


def transpose_1_2(x: jax.Array) -> jax.Array:
    """Pallas equivalent of torch Transpose(1, 2) on a rank-3 (B, S, H) tensor."""
    assert x.ndim == 3, "expected (B, S, H) input"
    B, S, H = x.shape
    itemsize = jnp.dtype(x.dtype).itemsize

    # Tile targets (multiples of 128). ts is the output lane dim -> keep it
    # wide so stores are unmasked multi-vreg vst; th narrower for f32, wider
    # for sub-32-bit dtypes (bf16 packs 16x128 per vreg).
    ts_target = 1024
    th_target = 512 if itemsize >= 4 else 1024

    # Each block dim is the lane dim of one spec and the sublane dim of the
    # other, so it must be a multiple of 128 OR equal to the full array dim.
    # min(dim, target) satisfies this: the target is a multiple of 128, and
    # when the dim is smaller we take the full dim. Ragged remainders
    # (dim > target, dim % target != 0) become masked edge blocks; the OOB
    # garbage read on the input edge only lands in OOB (masked) output
    # positions because the in/out ragged regions correspond under transpose.
    ts = min(S, ts_target)
    th = min(H, th_target)

    grid = (B, pl.cdiv(S, ts), pl.cdiv(H, th))

    return pl.pallas_call(
        _transpose_kernel,
        out_shape=jax.ShapeDtypeStruct((B, H, S), x.dtype),
        grid_spec=pltpu.PrefetchScalarGridSpec(
            num_scalar_prefetch=0,
            grid=grid,
            in_specs=[
                pl.BlockSpec(
                    (pl.Squeezed(), ts, th),
                    lambda b, i, j: (b, i, j),
                )
            ],
            out_specs=pl.BlockSpec(
                (pl.Squeezed(), th, ts),
                lambda b, i, j: (b, j, i),  # swapped block indices = transpose
            ),
        ),
        compiler_params=pltpu.CompilerParams(
            # Every grid point writes a distinct output block -> fully
            # parallel; enough points to feed both v7x TensorCores at B=1-2
            # (both TCs share chip HBM, so expect chip roofline, not 2x).
            dimension_semantics=("parallel", "parallel", "parallel"),
            # ~8 MiB of double-buffered tiles; explicit cap covers v5e's
            # 16 MiB scoped default and leaves headroom on v7x (64 MiB phys).
            vmem_limit_bytes=32 * 1024 * 1024,
        ),
    )(x)


# Below this size pallas_call launch overhead dominates; let XLA fuse the
# transpose into a neighbouring op instead.
_FAST_PATH_BYTES = 1 << 20


class TransposePallas:
    """Mirrors the nn.Module: Transpose(*dims). Only dims==(1,2)/(2,1) on a
    rank-3 tensor hits the Pallas kernel (the only case in the Conformer)."""

    def __init__(self, *dims):
        self.dims = dims

    def __call__(self, x: jax.Array) -> jax.Array:
        d0, d1 = self.dims
        if x.ndim == 3 and {d0 % x.ndim, d1 % x.ndim} == {1, 2}:
            if x.size * jnp.dtype(x.dtype).itemsize >= _FAST_PATH_BYTES:
                return transpose_1_2(x)
            # Tiny activations: a standalone kernel can't beat XLA here.
            return jnp.swapaxes(x, 1, 2)
        # TODO(synk): general-rank / other-axis transpose falls back to plain JAX.
        perm = list(range(x.ndim))
        perm[d0], perm[d1] = perm[d1], perm[d0]
        return jnp.transpose(x, perm)


if __name__ == "__main__":
    module = TransposePallas(1, 2)

    # 1) Tiny Conformer-like shape (batch, seq, hidden): exercises the module
    #    fast path (below the kernel threshold).
    B, S, H = 2, 8, 32
    x0 = jax.random.normal(jax.random.PRNGKey(0), (B, S, H), dtype=jnp.float32)
    y0 = jax.block_until_ready(module(x0))
    assert y0.shape == (B, H, S) and y0.dtype == x0.dtype
    assert jnp.array_equal(y0, jnp.swapaxes(x0, 1, 2)), "fast-path mismatch"

    # 2) Pallas kernel via the module: f32, ragged S (1280 -> one full 1024
    #    tile + masked edge block) and full-dim unaligned H (192).
    x1 = jax.random.normal(jax.random.PRNGKey(1), (2, 1280, 192), dtype=jnp.float32)
    y1 = jax.block_until_ready(module(x1))
    assert y1.shape == (2, 192, 1280) and y1.dtype == x1.dtype
    assert jnp.array_equal(y1, jnp.swapaxes(x1, 1, 2)), "f32 ragged-S mismatch"

    # 3) Pallas kernel: bf16, ragged in both dims, full-dim blocks (200, 144)
    #    — the regression check for the no-pad ragged path.
    x2 = jax.random.normal(jax.random.PRNGKey(2), (2, 200, 144)).astype(jnp.bfloat16)
    y2 = jax.block_until_ready(transpose_1_2(x2))
    assert y2.shape == (2, 144, 200) and y2.dtype == x2.dtype
    assert jnp.array_equal(y2, jnp.swapaxes(x2, 1, 2)), "bf16 ragged mismatch"

    # 4) Pallas kernel: f32 with both dims larger than the tile targets and
    #    ragged -> multi-block grid with masked edge blocks in both directions.
    x3 = jax.random.normal(jax.random.PRNGKey(3), (1, 1152, 640), dtype=jnp.float32)
    y3 = jax.block_until_ready(transpose_1_2(x3))
    assert y3.shape == (1, 640, 1152) and y3.dtype == x3.dtype
    assert jnp.array_equal(y3, jnp.swapaxes(x3, 1, 2)), "f32 multi-tile mismatch"

    print("KERNEL_OK")
</pallas_src>

<mosaic_0001>
module attributes {stable_mosaic.version = 11 : i64} {
  func.func @_transpose_kernel(%arg0: i32, %arg1: i32, %arg2: i32, %arg3: memref<1x1024x192xf32, #tpu.memory_space<vmem>>, %arg4: memref<1x192x1024xf32, #tpu.memory_space<vmem>>) attributes {dimension_semantics = [#tpu.dimension_semantics<parallel>, #tpu.dimension_semantics<parallel>, #tpu.dimension_semantics<parallel>], iteration_bounds = array<i64: 2, 2, 1>, scalar_prefetch = 0 : i64, scratch_operands = 0 : i64, tpu.core_type = #tpu.core_type<tc>, window_params = [{transform_indices = @transform_0, window_bounds = array<i64: 1, 1024, 192>}, {transform_indices = @transform_1, window_bounds = array<i64: 1, 192, 1024>}]} {
    %c0 = arith.constant 0 : index
    %c0_0 = arith.constant 0 : index
    %c0_1 = arith.constant 0 : index
    %0 = vector.load %arg3[%c0, %c0_0, %c0_1] : memref<1x1024x192xf32, #tpu.memory_space<vmem>>, vector<1x1024x192xf32>
    %1 = vector.shape_cast %0 : vector<1x1024x192xf32> to vector<1024x192xf32>
    %2 = tpu.transpose %1, [1, 0] : vector<1024x192xf32> -> vector<192x1024xf32>
    %c0_2 = arith.constant 0 : index
    %c0_3 = arith.constant 0 : index
    %c0_4 = arith.constant 0 : index
    %3 = vector.load %arg4[%c0_2, %c0_3, %c0_4] : memref<1x192x1024xf32, #tpu.memory_space<vmem>>, vector<1x192x1024xf32>
    %4 = vector.shape_cast %3 : vector<1x192x1024xf32> to vector<192x1024xf32>
    %5 = vector.shape_cast %2 : vector<192x1024xf32> to vector<1x192x1024xf32>
    tpu.vector_store %arg4[%c0_2, %c0_3, %c0_4], %5 {strides = array<i32>} : memref<1x192x1024xf32, #tpu.memory_space<vmem>>, vector<1x192x1024xf32>,
    return
  }
  func.func @transform_0(%arg0: i32, %arg1: i32, %arg2: i32) -> (i32, i32, i32) {
    %c0_i32 = arith.constant 0 : i32
    return %arg0, %arg1, %arg2 : i32, i32, i32
  }
  func.func @transform_1(%arg0: i32, %arg1: i32, %arg2: i32) -> (i32, i32, i32) {
    %c0_i32 = arith.constant 0 : i32
    return %arg0, %arg2, %arg1 : i32, i32, i32
  }
}

</mosaic_0001>

<bundles_post_ra>
// kernel: tpu_custom_call.1
= control target key start
LH: loop header
LB: loop body
LE: loop exit
PB: predicated region body
PF: predicated region fallthrough
CT: control target
= control target key end

     0   :  { %6 = vsyncpa [#allocation3], 0  ;;  %s2107_s0 = inlined_call_operand.vmem [shape: f32[2,1280,192], index: 0, kind: input, shape index: {}]   ;;  %s2108_s1 = inlined_call_operand.hbm [shape: f32[2,192,1280], index: 1, kind: output, shape index: {}]  }
   0x1   :  { %8 = vsyncpa [#allocation3 + $0x1], 0  ;;  %s1497_s6 = smov 0   ;;  %s1499_s7 = smov 0  }
   0x2   :  { %s1501_s8 = smov 0   ;;  %s1503_s9 = smov 0  }
   0x3   :  { %s1505_s10 = smov 0   ;;  %s1507_s11 = smov 0  }
   0x4   :  { %s1509_s12 = smov 0   ;;  %s1511_s13 = smov 0  }
   0x5 LB: > { %s1286_s14 = sadd.s32 4294967295, %s1482_s13   ;;  %s1287_s15 = sadd.s32 4294967294, %s1482_s13   ;;  %s1482_s13 = sphi %s1511_s13, %s14_s13   ;;  %s1478_s12 = sphi %s1509_s12, %s2118_s12   ;;  %s1474_s11 = sphi %s1507_s11, %s2117_s11   ;;  %s1470_s10 = sphi %s1505_s10, %s2116_s10   ;;  %s1466_s9 = sphi %s1503_s9, %s2115_s9   ;;  %s1462_s8 = sphi %s1501_s8, %s2114_s8   ;;  %s1458_s7 = sphi %s1499_s7, %s2113_s7   ;;  %s1454_s6 = sphi %s1497_s6, %s2112_s6  }
   0x6   : > { %s29_s16 = sadd.s32 1, %s1474_s11  ;;  %s33_s17 = sadd.s32 1, %s1478_s12 }
   0x7   : > { %p31_p0 = scmp.ge.s32.totalorder %s29_s16, 2  ;;  %p84_p1 = scmp.ne.s32.totalorder %s1462_s8, %s1458_s7 }
   0x8   : > { %p85_p2 = scmp.eq.s32.totalorder %s1286_s14, 3  ;;  %p90_p5 = scmp.ne.s32.totalorder %s1458_s7, %s1454_s6 }
   0x9   : > { %s2120_s16 = smov (%p31_p0, %s29_s16), 0  ;;  %s2122_s17 = smov (!%p31_p0, %s33_s17), %s1478_s12 }
   0xa   : > { %s70_s18 = ssub.s32 %s1474_s11, %s2120_s16  ;;  %p1548_p3 = por %p85_p2, %p84_p1 }
   0xb   : > { %p35_p4 = scmp.ge.s32.totalorder %s2122_s17, 2  ;;  %p91_p6 = scmp.eq.s32.totalorder %s1287_s15, 3 }
   0xc   : > { %p1290_p7 = scmp.ge.s32.totalorder %s1482_s13, 1  ;;  %p138_p9 = scmp.lt.s32.totalorder %s1482_s13, 5 }
   0xd   : > { %s2124_s17 = smov (%p35_p4, %s2122_s17), 0  ;;  %p1557_p8 = por %p91_p6, %p90_p5 }
   0xe   : > { %s67_s21 = ssub.s32 %s1478_s12, %s2124_s17  ;;  %s74_s22 = sadd.s32 1, %s1462_s8 }
   0xf   : > { %s71_s23 = sor.u32 %s70_s18, %s67_s21  ;;  %p139_p10 = pnand %p1290_p7, %p138_p9 }
  0x10   : > { %p72_p11 = scmp.eq.s32.totalorder %s71_s23, 0  ;;  %s1291_s25 = sshll.u32 (!%p139_p10), %s1466_s9, 7 }
  0x11   : > { %142 = sbr.rel (%p139_p10) target bundleno = 929 (0x3a1), region = 24  ;;  %p179_p12 = scmp.lt.s32.totalorder (!%p139_p10), %s1470_s10, 1 }
  0x12   : > { %s1566_s24 = scalar_select %p72_p11, %s1462_s8, %s74_s22  }
  0x13   : > { %p181_p13 = scmp.lt.s32.totalorder (!%p139_p10), %s1291_s25, 159  ;;  %s169_s5 = sand.u32 (!%p139_p10), 1, %s1458_s7  }
  0x14   : > { %s1302_s14 = smul.u32 (!%p139_p10), 1536, %s169_s5  ;;  %s2031_s18 = scalar_lea.sflag (!%p139_p10), [#allocation3], %s169_s5 }
  0x16   : > { %s180_s26 = scalar_select %p179_p12, %s1470_s10, 1 }
  0x17   : > { %s2126_s25 = smov (!%p181_p13, %s1291_s25), 159  ;;  %s1662_s15 = scalar_lea.vmem [#allocation2], %s1302_s14 }
  0x18   : > { %s1303_s27 = smul.u32 320, %s180_s26  ;;  %s1292_s28 = sshll.u32 %s2126_s25, 1 }
  0x19   : > { %s1294_s21 = sshll.u32 (%p1548_p3), %s1466_s9, 3 }
  0x1a   : > { %s188_s29 = sadd.s32 %s1303_s27, %s1292_s28  ;;  %s1174_s22 = ssub.s32 (%p1548_p3), 10, %s1294_s21 }
  0x1b   : > { %s1293_s30 = sshll.u32 %s188_s29, 3  ;;  %p1175_p0 = scmp.lt.s32.totalorder (%p1548_p3), %s1174_s22, 8 }
  0x1c   : > { %s1574_s4 = scalar_lea.vmem %s2107_s0, %s1293_s30 }
  0x1d   : > { %v204_v0 = vld [vmem:[%s1574_s4] sm:$0xff]  ;;  %v206_v1 = vld [vmem:[%s1574_s4 + $0x10] sm:$0xff]  ;;  %v205_v19 = vld [vmem:[%s1574_s4 + $0x8] sm:$0xff] }
  0x1e   : > { %460 = vxpose.xlu0.b32.start [1/16] %v204_v0, 128  ;;  %v208_v2 = vld [vmem:[%s1574_s4 + $0x20] sm:$0xff]  ;;  %v210_v3 = vld [vmem:[%s1574_s4 + $0x30] sm:$0xff]  ;;  %492 = vxpose.xlu1.b32.start [1/16] (narrow) %v205_v19, 64  ;;  %v207_v22 = vld [vmem:[%s1574_s4 + $0x18] sm:$0xff] }
  0x1f   : > { %v212_v4 = vld [vmem:[%s1574_s4 + $0x40] sm:$0xff]  ;;  %v214_v5 = vld [vmem:[%s1574_s4 + $0x50] sm:$0xff]  ;;  %v209_v25 = vld [vmem:[%s1574_s4 + $0x28] sm:$0xff] }
  0x20   : > { %v236_v6 = vld [vmem:[%s1574_s4 + $0x100] sm:$0xff]  ;;  %v238_v8 = vld [vmem:[%s1574_s4 + $0x110] sm:$0xff]  ;;  %v211_v28 = vld [vmem:[%s1574_s4 + $0x38] sm:$0xff] }
  0x21   : > { %524 = vxpose.xlu2.b32.start [1/16] %v236_v6, 128  ;;  %v216_v7 = vld [vmem:[%s1574_s4 + $0x60] sm:$0xff]  ;;  %v218_v9 = vld [vmem:[%s1574_s4 + $0x70] sm:$0xff]  ;;  %v213_v31 = vld [vmem:[%s1574_s4 + $0x48] sm:$0xff] }
  0x22   : > { %v240_v10 = vld [vmem:[%s1574_s4 + $0x120] sm:$0xff]  ;;  %v242_v12 = vld [vmem:[%s1574_s4 + $0x130] sm:$0xff]  ;;  %v237_v32 = vld [vmem:[%s1574_s4 + $0x108] sm:$0xff] }
  0x23   : > { %v220_v11 = vld [vmem:[%s1574_s4 + $0x80] sm:$0xff]  ;;  %v222_v13 = vld [vmem:[%s1574_s4 + $0x90] sm:$0xff]  ;;  %v215_v34 = vld [vmem:[%s1574_s4 + $0x58] sm:$0xff] }
  0x24   : > { %v244_v14 = vld [vmem:[%s1574_s4 + $0x140] sm:$0xff]  ;;  %v246_v16 = vld [vmem:[%s1574_s4 + $0x150] sm:$0xff]  ;;  %v239_v35 = vld [vmem:[%s1574_s4 + $0x118] sm:$0xff] }
  0x25   : > { %v224_v15 = vld [vmem:[%s1574_s4 + $0xa0] sm:$0xff]  ;;  %v226_v17 = vld [vmem:[%s1574_s4 + $0xb0] sm:$0xff]  ;;  %v217_v37 = vld [vmem:[%s1574_s4 + $0x68] sm:$0xff] }
  0x26   : > { %461 = vxpose.xlu0.b32.cont [2/16] %v206_v1, 128  ;;  %v248_v18 = vld [vmem:[%s1574_s4 + $0x160] sm:$0xff]  ;;  %v250_v21 = vld [vmem:[%s1574_s4 + $0x170] sm:$0xff]  ;;  %493 = vxpose.xlu1.b32.cont [2/16] (narrow) %v207_v22, 64  ;;  %v241_v38 = vld [vmem:[%s1574_s4 + $0x128] sm:$0xff] }
  0x27   : > { %v228_v20 = vld [vmem:[%s1574_s4 + $0xc0] sm:$0xff]  ;;  %v230_v23 = vld [vmem:[%s1574_s4 + $0xd0] sm:$0xff]  ;;  %v219_v40 = vld [vmem:[%s1574_s4 + $0x78] sm:$0xff] }
  0x28   : > { %v252_v24 = vld [vmem:[%s1574_s4 + $0x180] sm:$0xff]  ;;  %v254_v27 = vld [vmem:[%s1574_s4 + $0x190] sm:$0xff]  ;;  %v243_v41 = vld [vmem:[%s1574_s4 + $0x138] sm:$0xff] }
  0x29   : > { %525 = vxpose.xlu2.b32.cont [2/16] %v238_v8, 128  ;;  %v232_v26 = vld [vmem:[%s1574_s4 + $0xe0] sm:$0xff]  ;;  %v234_v29 = vld [vmem:[%s1574_s4 + $0xf0] sm:$0xff]  ;;  %v221_v43 = vld [vmem:[%s1574_s4 + $0x88] sm:$0xff] }
  0x2a   : > { %v256_v30 = vld [vmem:[%s1574_s4 + $0x1a0] sm:$0xff]  ;;  %v258_v33 = vld [vmem:[%s1574_s4 + $0x1b0] sm:$0xff]  ;;  %v245_v44 = vld [vmem:[%s1574_s4 + $0x148] sm:$0xff] }
  0x2b   : > { %v260_v36 = vld [vmem:[%s1574_s4 + $0x1c0] sm:$0xff]  ;;  %v262_v39 = vld [vmem:[%s1574_s4 + $0x1d0] sm:$0xff]  ;;  %v223_v46 = vld [vmem:[%s1574_s4 + $0x98] sm:$0xff] }
  0x2c   : > { %v264_v42 = vld [vmem:[%s1574_s4 + $0x1e0] sm:$0xff]  ;;  %v266_v45 = vld [vmem:[%s1574_s4 + $0x1f0] sm:$0xff]  ;;  %v247_v47 = vld [vmem:[%s1574_s4 + $0x158] sm:$0xff] }
  0x2d   : > { %v269_v48 = vld [vmem:[%s1574_s4 + $0x208] sm:$0xff]  ;;  %v271_v51 = vld [vmem:[%s1574_s4 + $0x218] sm:$0xff]  ;;  %v270_v6 = vld [vmem:[%s1574_s4 + $0x210] sm:$0xff] }
  0x2e   : > { %462 = vxpose.xlu0.b32.cont [3/16] %v208_v2, 128  ;;  %494 = vxpose.xlu1.b32.cont [3/16] (narrow) %v209_v25, 64  ;;  %v225_v49 = vld [vmem:[%s1574_s4 + $0xa8] sm:$0xff]  ;;  %v227_v52 = vld [vmem:[%s1574_s4 + $0xb8] sm:$0xff]  ;;  %v278_v19 = vld [vmem:[%s1574_s4 + $0x250] sm:$0xff] }
  0x2f   : > { %v249_v50 = vld [vmem:[%s1574_s4 + $0x168] sm:$0xff]  ;;  %v251_v53 = vld [vmem:[%s1574_s4 + $0x178] sm:$0xff] }
  0x30   : > { %v273_v54 = vld [vmem:[%s1574_s4 + $0x228] sm:$0xff]  ;;  %v275_v57 = vld [vmem:[%s1574_s4 + $0x238] sm:$0xff] }
  0x31   : > { %526 = vxpose.xlu2.b32.cont [3/16] %v240_v10, 128  ;;  %v229_v55 = vld [vmem:[%s1574_s4 + $0xc8] sm:$0xff]  ;;  %v231_v58 = vld [vmem:[%s1574_s4 + $0xd8] sm:$0xff] }
  0x32   : > { %v253_v56 = vld [vmem:[%s1574_s4 + $0x188] sm:$0xff]  ;;  %v255_v59 = vld [vmem:[%s1574_s4 + $0x198] sm:$0xff] }
  0x33   : > { %v277_v60 = vld [vmem:[%s1574_s4 + $0x248] sm:$0xff]  ;;  %v279_v63 = vld [vmem:[%s1574_s4 + $0x258] sm:$0xff] }
  0x34   : > { %v233_v61 = vld [vmem:[%s1574_s4 + $0xe8] sm:$0xff]  ;;  %v235_v0 = vld [vmem:[%s1574_s4 + $0xf8] sm:$0xff] }
  0x35   : > { %v257_v62 = vld [vmem:[%s1574_s4 + $0x1a8] sm:$0xff]  ;;  %v259_v1 = vld [vmem:[%s1574_s4 + $0x1b8] sm:$0xff] }
  0x36   : > { %463 = vxpose.xlu0.b32.cont [4/16] %v210_v3, 128  ;;  %495 = vxpose.xlu1.b32.cont [4/16] (narrow) %v211_v28, 64  ;;  %v281_v2 = vld [vmem:[%s1574_s4 + $0x268] sm:$0xff]  ;;  %v268_v3 = vld [vmem:[%s1574_s4 + $0x200] sm:$0xff]  ;;  %v295_v25 = vld [vmem:[%s1574_s4 + $0x2d8] sm:$0xff] }
  0x37   : > { %v285_v8 = vld [vmem:[%s1574_s4 + $0x288] sm:$0xff]  ;;  %v306_v28 = vld [vmem:[%s1574_s4 + $0x330] sm:$0xff] }
  0x38   : > { %v265_v10 = vld [vmem:[%s1574_s4 + $0x1e8] sm:$0xff] }
  0x39   : > { %527 = vxpose.xlu2.b32.cont [4/16] %v242_v12, 128  ;;  %v274_v12 = vld [vmem:[%s1574_s4 + $0x230] sm:$0xff] }
  0x3e   : > { %464 = vxpose.xlu0.b32.cont [5/16] %v212_v4, 128  ;;  %496 = vxpose.xlu1.b32.cont [5/16] (narrow) %v213_v31, 64  ;;  %v261_v4 = vld [vmem:[%s1574_s4 + $0x1c8] sm:$0xff]  ;;  %v284_v31 = vld [vmem:[%s1574_s4 + $0x280] sm:$0xff] }
  0x41   : > { %528 = vxpose.xlu2.b32.cont [5/16] %v244_v14, 128  ;;  %v289_v14 = vld [vmem:[%s1574_s4 + $0x2a8] sm:$0xff] }
  0x46   : > { %465 = vxpose.xlu0.b32.cont [6/16] %v214_v5, 128  ;;  %497 = vxpose.xlu1.b32.cont [6/16] (narrow) %v215_v34, 64  ;;  %v283_v5 = vld [vmem:[%s1574_s4 + $0x278] sm:$0xff] }
  0x49   : > { %529 = vxpose.xlu2.b32.cont [6/16] %v246_v16, 128  ;;  %v300_v16 = vld [vmem:[%s1574_s4 + $0x300] sm:$0xff] }
  0x4e   : > { %466 = vxpose.xlu0.b32.cont [7/16] %v216_v7, 128  ;;  %498 = vxpose.xlu1.b32.cont [7/16] (narrow) %v217_v37, 64  ;;  %v263_v7 = vld [vmem:[%s1574_s4 + $0x1d8] sm:$0xff]  ;;  %v332_v37 = vld [vmem:[%s1574_s4 + $0x400] sm:$0xff] }
  0x51   : > { %530 = vxpose.xlu2.b32.cont [7/16] %v248_v18, 128 }
  0x56   : > { %467 = vxpose.xlu0.b32.cont [8/16] %v218_v9, 128  ;;  %499 = vxpose.xlu1.b32.cont [8/16] (narrow) %v219_v40, 64  ;;  %v272_v9 = vld [vmem:[%s1574_s4 + $0x220] sm:$0xff] }
  0x57   : > { %v312_v40 = vld [vmem:[%s1574_s4 + $0x360] sm:$0xff] }
  0x59   : > { %531 = vxpose.xlu2.b32.cont [8/16] %v250_v21, 128  ;;  %v293_v21 = vld [vmem:[%s1574_s4 + $0x2c8] sm:$0xff] }
  0x5e   : > { %468 = vxpose.xlu0.b32.cont [9/16] %v220_v11, 128  ;;  %500 = vxpose.xlu1.b32.cont [9/16] (narrow) %v221_v43, 64  ;;  %v287_v11 = vld [vmem:[%s1574_s4 + $0x298] sm:$0xff]  ;;  %v290_v43 = vld [vmem:[%s1574_s4 + $0x2b0] sm:$0xff] }
  0x61   : > { %532 = vxpose.xlu2.b32.cont [9/16] %v252_v24, 128  ;;  %v304_v24 = vld [vmem:[%s1574_s4 + $0x320] sm:$0xff] }
  0x66   : > { %469 = vxpose.xlu0.b32.cont [10/16] %v222_v13, 128  ;;  %501 = vxpose.xlu1.b32.cont [10/16] (narrow) %v223_v46, 64  ;;  %v267_v13 = vld [vmem:[%s1574_s4 + $0x1f8] sm:$0xff] }
  0x69   : > { %533 = vxpose.xlu2.b32.cont [10/16] %v254_v27, 128  ;;  %v282_v27 = vld [vmem:[%s1574_s4 + $0x270] sm:$0xff] }
  0x6e   : > { %470 = vxpose.xlu0.b32.cont [11/16] %v224_v15, 128  ;;  %502 = vxpose.xlu1.b32.cont [11/16] (narrow) %v225_v49, 64  ;;  %v276_v15 = vld [vmem:[%s1574_s4 + $0x240] sm:$0xff]  ;;  %v338_v49 = vld [vmem:[%s1574_s4 + $0x430] sm:$0xff] }
  0x71   : > { %534 = vxpose.xlu2.b32.cont [11/16] %v256_v30, 128 }
  0x76   : > { %471 = vxpose.xlu0.b32.cont [12/16] %v226_v17, 128  ;;  %503 = vxpose.xlu1.b32.cont [12/16] (narrow) %v227_v52, 64  ;;  %v291_v17 = vld [vmem:[%s1574_s4 + $0x2b8] sm:$0xff]  ;;  %v294_v52 = vld [vmem:[%s1574_s4 + $0x2d0] sm:$0xff] }
  0x79   : > { %535 = vxpose.xlu2.b32.cont [12/16] %v258_v33, 128  ;;  %v299_v33 = vld [vmem:[%s1574_s4 + $0x2f8] sm:$0xff] }
  0x7e   : > { %472 = vxpose.xlu0.b32.cont [13/16] %v228_v20, 128  ;;  %504 = vxpose.xlu1.b32.cont [13/16] (narrow) %v229_v55, 64  ;;  %v302_v20 = vld [vmem:[%s1574_s4 + $0x310] sm:$0xff] }
  0x81   : > { %536 = vxpose.xlu2.b32.cont [13/16] %v260_v36, 128  ;;  %v310_v36 = vld [vmem:[%s1574_s4 + $0x350] sm:$0xff] }
  0x86   : > { %473 = vxpose.xlu0.b32.cont [14/16] %v230_v23, 128  ;;  %505 = vxpose.xlu1.b32.cont [14/16] (narrow) %v231_v58, 64  ;;  %v280_v23 = vld [vmem:[%s1574_s4 + $0x260] sm:$0xff] }
  0x87   : > { %v320_v58 = vld [vmem:[%s1574_s4 + $0x3a0] sm:$0xff] }
  0x89   : > { %537 = vxpose.xlu2.b32.cont [14/16] %v262_v39, 128  ;;  %v288_v39 = vld [vmem:[%s1574_s4 + $0x2a0] sm:$0xff] }
  0x8e   : > { %474 = vxpose.xlu0.b32.cont [15/16] %v232_v26, 128  ;;  %506 = vxpose.xlu1.b32.cont [15/16] (narrow) %v233_v61, 64 }
  0x91   : > { %538 = vxpose.xlu2.b32.cont [15/16] %v264_v42, 128 }
  0x96   : > { %475 = vxpose.xlu0.b32.end [16/16] %v234_v29, 128  ;;  %507 = vxpose.xlu1.b32.end [16/16] (narrow) %v235_v0, 64  ;;  %v297_v29 = vld [vmem:[%s1574_s4 + $0x2e8] sm:$0xff]  ;;  %v344_v0 = vld [vmem:[%s1574_s4 + $0x460] sm:$0xff] }
  0x99   : > { %539 = vxpose.xlu2.b32.end [16/16] %v266_v45, 128  ;;  %v336_v45 = vld [vmem:[%s1574_s4 + $0x420] sm:$0xff] }
  0x9e   : > { %556 = vxpose.xlu0.b32.start [1/16] (narrow) %v237_v32, 64  ;;  %588 = vxpose.xlu1.b32.start [1/16] %v268_v3, 128  ;;  %v308_v32 = vld [vmem:[%s1574_s4 + $0x340] sm:$0xff]  ;;  %v301_v3 = vld [vmem:[%s1574_s4 + $0x308] sm:$0xff] }
  0xa1   : > { %620 = vxpose.xlu2.b32.start [1/16] (narrow) %v269_v48, 64  ;;  %v316_v48 = vld [vmem:[%s1574_s4 + $0x380] sm:$0xff] }
  0xa6   : > { %557 = vxpose.xlu0.b32.cont [2/16] (narrow) %v239_v35, 64  ;;  %589 = vxpose.xlu1.b32.cont [2/16] %v270_v6, 128  ;;  %v286_v35 = vld [vmem:[%s1574_s4 + $0x290] sm:$0xff] }
  0xa9   : > { %621 = vxpose.xlu2.b32.cont [2/16] (narrow) %v271_v51, 64 }
  0xae   : > { %558 = vxpose.xlu0.b32.cont [3/16] (narrow) %v241_v38, 64  ;;  %590 = vxpose.xlu1.b32.cont [3/16] %v272_v9, 128  ;;  %v326_v9 = vld [vmem:[%s1574_s4 + $0x3d0] sm:$0xff] }
  0xb1   : > { %622 = vxpose.xlu2.b32.cont [3/16] (narrow) %v273_v54, 64  ;;  %v340_v54 = vld [vmem:[%s1574_s4 + $0x440] sm:$0xff] }
  0xb6   : > { %559 = vxpose.xlu0.b32.cont [4/16] (narrow) %v243_v41, 64  ;;  %591 = vxpose.xlu1.b32.cont [4/16] %v274_v12, 128  ;;  %v334_v41 = vld [vmem:[%s1574_s4 + $0x410] sm:$0xff] }
  0xb9   : > { %623 = vxpose.xlu2.b32.cont [4/16] (narrow) %v275_v57, 64  ;;  %v296_v57 = vld [vmem:[%s1574_s4 + $0x2e0] sm:$0xff] }
  0xbe   : > { %560 = vxpose.xlu0.b32.cont [5/16] (narrow) %v245_v44, 64  ;;  %592 = vxpose.xlu1.b32.cont [5/16] %v276_v15, 128  ;;  %v314_v44 = vld [vmem:[%s1574_s4 + $0x370] sm:$0xff] }
  0xbf   : > { %v350_v15 = vld [vmem:[%s1574_s4 + $0x490] sm:$0xff] }
  0xc1   : > { %624 = vxpose.xlu2.b32.cont [5/16] (narrow) %v277_v60, 64 }
  0xc2   : > { %v476_v18 = vpop.trf.xlu0 }
  0xc3   : > { %972 = vst [vmem:[%s1662_s15] sm:$0xff] %v476_v18  ;;  %v307_v18 = vld [vmem:[%s1574_s4 + $0x338] sm:$0xff] }
  0xc6   : > { %561 = vxpose.xlu0.b32.cont [6/16] (narrow) %v247_v47, 64  ;;  %593 = vxpose.xlu1.b32.cont [6/16] %v278_v19, 128  ;;  %v292_v47 = vld [vmem:[%s1574_s4 + $0x2c0] sm:$0xff]  ;;  %v330_v19 = vld [vmem:[%s1574_s4 + $0x3f0] sm:$0xff] }
  0xc9   : > { %625 = vxpose.xlu2.b32.cont [6/16] (narrow) %v279_v63, 64  ;;  %v322_v63 = vld [vmem:[%s1574_s4 + $0x3b0] sm:$0xff] }
  0xca   : > { %v477_v22 = vpop.trf.xlu0 }
  0xcb   : > { %980 = vst [vmem:[%s1662_s15 + $0x40] sm:$0xff] %v477_v22 }
  0xce   : > { %562 = vxpose.xlu0.b32.cont [7/16] (narrow) %v249_v50, 64  ;;  %594 = vxpose.xlu1.b32.cont [7/16] %v280_v23, 128  ;;  %v540_v50 = vpop.trf.xlu2  ;;  %v309_v23 = vld [vmem:[%s1574_s4 + $0x348] sm:$0xff] }
  0xcf   : > { %973 = vst [vmem:[%s1662_s15 + $0x8] sm:$0xff] %v540_v50 }
  0xd1   : > { %626 = vxpose.xlu2.b32.cont [7/16] (narrow) %v281_v2, 64 }
  0xd2   : > { %v478_v26 = vpop.trf.xlu0 }
  0xd3   : > { %988 = vst [vmem:[%s1662_s15 + $0x80] sm:$0xff] %v478_v26 }
  0xd6   : > { %563 = vxpose.xlu0.b32.cont [8/16] (narrow) %v251_v53, 64  ;;  %595 = vxpose.xlu1.b32.cont [8/16] %v282_v27, 128  ;;  %v318_v53 = vld [vmem:[%s1574_s4 + $0x390] sm:$0xff]  ;;  %v541_v55 = vpop.trf.xlu2  ;;  %v508_v27 = vpop.trf.xlu1 }
  0xd7   : > { %981 = vst [vmem:[%s1662_s15 + $0x48] sm:$0xff] %v541_v55  ;;  %v365_v55 = vld [vmem:[%s1574_s4 + $0x508] sm:$0xff] }
  0xd8   : > { %1100 = vst [vmem:[%s1662_s15 + $0x400] sm:$0xff] %v508_v27  ;;  %v377_v27 = vld [vmem:[%s1574_s4 + $0x568] sm:$0xff] }
  0xd9   : > { %627 = vxpose.xlu2.b32.cont [8/16] (narrow) %v283_v5, 64  ;;  %v346_v5 = vld [vmem:[%s1574_s4 + $0x470] sm:$0xff] }
  0xda   : > { %v479_v30 = vpop.trf.xlu0 }
  0xdb   : > { %996 = vst [vmem:[%s1662_s15 + $0xc0] sm:$0xff] %v479_v30  ;;  %v335_v30 = vld [vmem:[%s1574_s4 + $0x418] sm:$0xff] }
  0xde   : > { %564 = vxpose.xlu0.b32.cont [9/16] (narrow) %v253_v56, 64  ;;  %596 = vxpose.xlu1.b32.cont [9/16] %v284_v31, 128  ;;  %v542_v60 = vpop.trf.xlu2  ;;  %v356_v31 = vld [vmem:[%s1574_s4 + $0x4c0] sm:$0xff] }
  0xdf   : > { %989 = vst [vmem:[%s1662_s15 + $0x88] sm:$0xff] %v542_v60  ;;  %v345_v60 = vld [vmem:[%s1574_s4 + $0x468] sm:$0xff] }
  0xe1   : > { %628 = vxpose.xlu2.b32.cont [9/16] (narrow) %v285_v8, 64  ;;  %v303_v8 = vld [vmem:[%s1574_s4 + $0x318] sm:$0xff] }
  0xe2   : > { %v480_v34 = vpop.trf.xlu0 }
  0xe3   : > { %1004 = vst [vmem:[%s1662_s15 + $0x100] sm:$0xff] %v480_v34  ;;  %v313_v34 = vld [vmem:[%s1574_s4 + $0x368] sm:$0xff] }
  0xe6   : > { %565 = vxpose.xlu0.b32.cont [10/16] (narrow) %v255_v59, 64  ;;  %597 = vxpose.xlu1.b32.cont [10/16] %v286_v35, 128  ;;  %v342_v59 = vld [vmem:[%s1574_s4 + $0x450] sm:$0xff] }
  0xe9   : > { %629 = vxpose.xlu2.b32.cont [10/16] (narrow) %v287_v11, 64 }
  0xea   : > { %v481_v38 = vpop.trf.xlu0 }
  0xeb   : > { %1012 = vst [vmem:[%s1662_s15 + $0x140] sm:$0xff] %v481_v38 }
  0xee   : > { %566 = vxpose.xlu0.b32.cont [11/16] (narrow) %v257_v62, 64  ;;  %598 = vxpose.xlu1.b32.cont [11/16] %v288_v39, 128  ;;  %v298_v62 = vld [vmem:[%s1574_s4 + $0x2f0] sm:$0xff] }
  0xf1   : > { %630 = vxpose.xlu2.b32.cont [11/16] (narrow) %v289_v14, 64  ;;  %v328_v14 = vld [vmem:[%s1574_s4 + $0x3e0] sm:$0xff] }
  0xf2   : > { %v482_v42 = vpop.trf.xlu0 }
  0xf3   : > { %1020 = vst [vmem:[%s1662_s15 + $0x180] sm:$0xff] %v482_v42  ;;  %v339_v42 = vld [vmem:[%s1574_s4 + $0x438] sm:$0xff] }
  0xf6   : > { %567 = vxpose.xlu0.b32.cont [12/16] (narrow) %v259_v1, 64  ;;  %599 = vxpose.xlu1.b32.cont [12/16] %v290_v43, 128  ;;  %v543_v1 = vpop.trf.xlu2  ;;  %v360_v43 = vld [vmem:[%s1574_s4 + $0x4e0] sm:$0xff] }
  0xf7   : > { %997 = vst [vmem:[%s1662_s15 + $0xc8] sm:$0xff] %v543_v1 }
  0xf9   : > { %631 = vxpose.xlu2.b32.cont [12/16] (narrow) %v291_v17, 64 }
  0xfa   : > { %v483_v46 = vpop.trf.xlu0 }
  0xfb   : > { %1028 = vst [vmem:[%s1662_s15 + $0x1c0] sm:$0xff] %v483_v46  ;;  %v317_v46 = vld [vmem:[%s1574_s4 + $0x388] sm:$0xff] }
  0xfe   : > { %568 = vxpose.xlu0.b32.cont [13/16] (narrow) %v261_v4, 64  ;;  %600 = vxpose.xlu1.b32.cont [13/16] %v292_v47, 128  ;;  %v324_v4 = vld [vmem:[%s1574_s4 + $0x3c0] sm:$0xff]  ;;  %v544_v6 = vpop.trf.xlu2 }
  0xff   : > { %1005 = vst [vmem:[%s1662_s15 + $0x108] sm:$0xff] %v544_v6  ;;  %v325_v6 = vld [vmem:[%s1574_s4 + $0x3c8] sm:$0xff] }
 0x101   : > { %632 = vxpose.xlu2.b32.cont [13/16] (narrow) %v293_v21, 64 }
 0x102   : > { %v484_v51 = vpop.trf.xlu0 }
 0x103   : > { %1036 = vst [vmem:[%s1662_s15 + $0x200] sm:$0xff] %v484_v51 }
 0x106   : > { %569 = vxpose.xlu0.b32.cont [14/16] (narrow) %v263_v7, 64  ;;  %601 = vxpose.xlu1.b32.cont [14/16] %v294_v52, 128  ;;  %v545_v11 = vpop.trf.xlu2  ;;  %v319_v52 = vld [vmem:[%s1574_s4 + $0x398] sm:$0xff] }
 0x107   : > { %1013 = vst [vmem:[%s1662_s15 + $0x148] sm:$0xff] %v545_v11 }
 0x109   : > { %633 = vxpose.xlu2.b32.cont [14/16] (narrow) %v295_v25, 64  ;;  %v354_v25 = vld [vmem:[%s1574_s4 + $0x4b0] sm:$0xff] }
 0x10a   : > { %v485_v56 = vpop.trf.xlu0 }
 0x10b   : > { %1044 = vst [vmem:[%s1662_s15 + $0x240] sm:$0xff] %v485_v56 }
 0x10e   : > { %570 = vxpose.xlu0.b32.cont [15/16] (narrow) %v265_v10, 64  ;;  %602 = vxpose.xlu1.b32.cont [15/16] %v296_v57, 128  ;;  %v348_v10 = vld [vmem:[%s1574_s4 + $0x480] sm:$0xff] }
 0x111   : > { %634 = vxpose.xlu2.b32.cont [15/16] (narrow) %v297_v29, 64 }
 0x112   : > { %v486_v61 = vpop.trf.xlu0 }
 0x113   : > { %1052 = vst [vmem:[%s1662_s15 + $0x280] sm:$0xff] %v486_v61  ;;  %v367_v61 = vld [vmem:[%s1574_s4 + $0x518] sm:$0xff] }
 0x116   : > { %571 = vxpose.xlu0.b32.end [16/16] (narrow) %v267_v13, 64  ;;  %603 = vxpose.xlu1.b32.end [16/16] %v298_v62, 128  ;;  %v305_v13 = vld [vmem:[%s1574_s4 + $0x328] sm:$0xff] }
 0x119   : > { %635 = vxpose.xlu2.b32.end [16/16] (narrow) %v299_v33, 64  ;;  %v509_v33 = vpop.trf.xlu1 }
 0x11a   : > { %v487_v2 = vpop.trf.xlu0  ;;  %1108 = vst [vmem:[%s1662_s15 + $0x440] sm:$0xff] %v509_v33  ;;  %v379_v33 = vld [vmem:[%s1574_s4 + $0x578] sm:$0xff] }
 0x11b   : > { %1060 = vst [vmem:[%s1662_s15 + $0x2c0] sm:$0xff] %v487_v2  ;;  %v347_v2 = vld [vmem:[%s1574_s4 + $0x478] sm:$0xff] }
 0x11e   : > { %652 = vxpose.xlu0.b32.start [1/16] %v300_v16, 128  ;;  %684 = vxpose.xlu1.b32.start [1/16] (narrow) %v301_v3, 64  ;;  %v546_v16 = vpop.trf.xlu2  ;;  %v369_v3 = vld [vmem:[%s1574_s4 + $0x528] sm:$0xff] }
 0x11f   : > { %1021 = vst [vmem:[%s1662_s15 + $0x188] sm:$0xff] %v546_v16 }
 0x121   : > { %716 = vxpose.xlu2.b32.start [1/16] %v332_v37, 128  ;;  %v358_v37 = vld [vmem:[%s1574_s4 + $0x4d0] sm:$0xff]  ;;  %v510_v39 = vpop.trf.xlu1 }
 0x122   : > { %v488_v7 = vpop.trf.xlu0  ;;  %1116 = vst [vmem:[%s1662_s15 + $0x480] sm:$0xff] %v510_v39  ;;  %v381_v39 = vld [vmem:[%s1574_s4 + $0x588] sm:$0xff] }
 0x123   : > { %1068 = vst [vmem:[%s1662_s15 + $0x300] sm:$0xff] %v488_v7 }
 0x126   : > { %653 = vxpose.xlu0.b32.cont [2/16] %v302_v20, 128  ;;  %685 = vxpose.xlu1.b32.cont [2/16] (narrow) %v303_v8, 64  ;;  %v352_v20 = vld [vmem:[%s1574_s4 + $0x4a0] sm:$0xff]  ;;  %v547_v21 = vpop.trf.xlu2  ;;  %v349_v8 = vld [vmem:[%s1574_s4 + $0x488] sm:$0xff] }
 0x127   : > { %1029 = vst [vmem:[%s1662_s15 + $0x1c8] sm:$0xff] %v547_v21  ;;  %v375_v21 = vld [vmem:[%s1574_s4 + $0x558] sm:$0xff] }
 0x129   : > { %717 = vxpose.xlu2.b32.cont [2/16] %v334_v41, 128 }
 0x12a   : > { %v489_v12 = vpop.trf.xlu0 }
 0x12b   : > { %1076 = vst [vmem:[%s1662_s15 + $0x340] sm:$0xff] %v489_v12  ;;  %v327_v12 = vld [vmem:[%s1574_s4 + $0x3d8] sm:$0xff] }
 0x12e   : > { %654 = vxpose.xlu0.b32.cont [3/16] %v304_v24, 128  ;;  %686 = vxpose.xlu1.b32.cont [3/16] (narrow) %v305_v13, 64  ;;  %v333_v24 = vld [vmem:[%s1574_s4 + $0x408] sm:$0xff]  ;;  %v548_v26 = vpop.trf.xlu2 }
 0x12f   : > { %1037 = vst [vmem:[%s1662_s15 + $0x208] sm:$0xff] %v548_v26  ;;  %v355_v26 = vld [vmem:[%s1574_s4 + $0x4b8] sm:$0xff] }
 0x131   : > { %718 = vxpose.xlu2.b32.cont [3/16] %v336_v45, 128  ;;  %v511_v45 = vpop.trf.xlu1 }
 0x132   : > { %v490_v17 = vpop.trf.xlu0  ;;  %1124 = vst [vmem:[%s1662_s15 + $0x4c0] sm:$0xff] %v511_v45  ;;  %v383_v45 = vld [vmem:[%s1574_s4 + $0x598] sm:$0xff] }
 0x133   : > { %1084 = vst [vmem:[%s1662_s15 + $0x380] sm:$0xff] %v490_v17 }
 0x136   : > { %655 = vxpose.xlu0.b32.cont [4/16] %v306_v28, 128  ;;  %687 = vxpose.xlu1.b32.cont [4/16] (narrow) %v307_v18, 64  ;;  %v311_v28 = vld [vmem:[%s1574_s4 + $0x358] sm:$0xff]  ;;  %v329_v18 = vld [vmem:[%s1574_s4 + $0x3e8] sm:$0xff] }
 0x139   : > { %719 = vxpose.xlu2.b32.cont [4/16] %v338_v49, 128  ;;  %v362_v49 = vld [vmem:[%s1574_s4 + $0x4f0] sm:$0xff]  ;;  %v512_v51 = vpop.trf.xlu1 }
 0x13a   : > { %v491_v22 = vpop.trf.xlu0  ;;  %1132 = vst [vmem:[%s1662_s15 + $0x500] sm:$0xff] %v512_v51  ;;  %v385_v51 = vld [vmem:[%s1574_s4 + $0x5a8] sm:$0xff] }
 0x13b   : > { %1092 = vst [vmem:[%s1662_s15 + $0x3c0] sm:$0xff] %v491_v22 }
 0x13e   : > { %656 = vxpose.xlu0.b32.cont [5/16] %v308_v32, 128  ;;  %688 = vxpose.xlu1.b32.cont [5/16] (narrow) %v309_v23, 64  ;;  %v549_v32 = vpop.trf.xlu2 }
 0x13f   : > { %1045 = vst [vmem:[%s1662_s15 + $0x248] sm:$0xff] %v549_v32  ;;  %v357_v32 = vld [vmem:[%s1574_s4 + $0x4c8] sm:$0xff] }
 0x141   : > { %720 = vxpose.xlu2.b32.cont [5/16] %v340_v54, 128  ;;  %v343_v54 = vld [vmem:[%s1574_s4 + $0x458] sm:$0xff]  ;;  %v513_v57 = vpop.trf.xlu1 }
 0x142   : > { %v572_v29 = vpop.trf.xlu0  ;;  %1140 = vst [vmem:[%s1662_s15 + $0x540] sm:$0xff] %v513_v57  ;;  %v387_v57 = vld [vmem:[%s1574_s4 + $0x5b8] sm:$0xff] }
 0x143   : > { %1101 = vst [vmem:[%s1662_s15 + $0x408] sm:$0xff] %v572_v29 }
 0x146   : > { %657 = vxpose.xlu0.b32.cont [6/16] %v310_v36, 128  ;;  %689 = vxpose.xlu1.b32.cont [6/16] (narrow) %v311_v28, 64  ;;  %v337_v36 = vld [vmem:[%s1574_s4 + $0x428] sm:$0xff]  ;;  %v550_v38 = vpop.trf.xlu2 }
 0x147   : > { %1053 = vst [vmem:[%s1662_s15 + $0x288] sm:$0xff] %v550_v38  ;;  %v359_v38 = vld [vmem:[%s1574_s4 + $0x4d8] sm:$0xff] }
 0x149   : > { %721 = vxpose.xlu2.b32.cont [6/16] %v342_v59, 128 }
 0x14a   : > { %v573_v35 = vpop.trf.xlu0 }
 0x14b   : > { %1109 = vst [vmem:[%s1662_s15 + $0x448] sm:$0xff] %v573_v35 }
 0x14e   : > { %658 = vxpose.xlu0.b32.cont [7/16] %v312_v40, 128  ;;  %690 = vxpose.xlu1.b32.cont [7/16] (narrow) %v313_v34, 64  ;;  %v315_v40 = vld [vmem:[%s1574_s4 + $0x378] sm:$0xff] }
 0x151   : > { %722 = vxpose.xlu2.b32.cont [7/16] %v344_v0, 128  ;;  %v323_v0 = vld [vmem:[%s1574_s4 + $0x3b8] sm:$0xff] }
 0x152   : > { %v574_v41 = vpop.trf.xlu0 }
 0x153   : > { %1117 = vst [vmem:[%s1662_s15 + $0x488] sm:$0xff] %v574_v41 }
 0x156   : > { %659 = vxpose.xlu0.b32.cont [8/16] %v314_v44, 128  ;;  %691 = vxpose.xlu1.b32.cont [8/16] (narrow) %v315_v40, 64  ;;  %v551_v44 = vpop.trf.xlu2 }
 0x157   : > { %1061 = vst [vmem:[%s1662_s15 + $0x2c8] sm:$0xff] %v551_v44  ;;  %v361_v44 = vld [vmem:[%s1574_s4 + $0x4e8] sm:$0xff] }
 0x159   : > { %723 = vxpose.xlu2.b32.cont [8/16] %v346_v5, 128 }
 0x15a   : > { %v575_v47 = vpop.trf.xlu0 }
 0x15b   : > { %1125 = vst [vmem:[%s1662_s15 + $0x4c8] sm:$0xff] %v575_v47 }
 0x15e   : > { %660 = vxpose.xlu0.b32.cont [9/16] %v316_v48, 128  ;;  %692 = vxpose.xlu1.b32.cont [9/16] (narrow) %v317_v46, 64  ;;  %v341_v48 = vld [vmem:[%s1574_s4 + $0x448] sm:$0xff]  ;;  %v552_v50 = vpop.trf.xlu2 }
 0x15f   : > { %1069 = vst [vmem:[%s1662_s15 + $0x308] sm:$0xff] %v552_v50  ;;  %v363_v50 = vld [vmem:[%s1574_s4 + $0x4f8] sm:$0xff] }
 0x161   : > { %724 = vxpose.xlu2.b32.cont [9/16] %v348_v10, 128 }
 0x166   : > { %661 = vxpose.xlu0.b32.cont [10/16] %v318_v53, 128  ;;  %v576_v53 = vpop.trf.xlu0  ;;  %693 = vxpose.xlu1.b32.cont [10/16] (narrow) %v319_v52, 64  ;;  %v553_v56 = vpop.trf.xlu2 }
 0x167   : > { %1133 = vst [vmem:[%s1662_s15 + $0x508] sm:$0xff] %v576_v53 }
 0x168   : > { %1077 = vst [vmem:[%s1662_s15 + $0x348] sm:$0xff] %v553_v56  ;;  %v396_v56 = vld [vmem:[%s1574_s4 + $0x600] sm:$0xff] }
 0x169   : > { %725 = vxpose.xlu2.b32.cont [10/16] %v350_v15, 128  ;;  %v373_v15 = vld [vmem:[%s1574_s4 + $0x548] sm:$0xff] }
 0x16e   : > { %662 = vxpose.xlu0.b32.cont [11/16] %v320_v58, 128  ;;  %v321_v58 = vld [vmem:[%s1574_s4 + $0x3a8] sm:$0xff]  ;;  %v577_v59 = vpop.trf.xlu0  ;;  %v554_v62 = vpop.trf.xlu2 }
 0x16f   : > { %694 = vxpose.xlu1.b32.cont [11/16] (narrow) %v321_v58, 64  ;;  %1141 = vst [vmem:[%s1662_s15 + $0x548] sm:$0xff] %v577_v59 }
 0x170   : > { %1085 = vst [vmem:[%s1662_s15 + $0x388] sm:$0xff] %v554_v62  ;;  %v398_v62 = vld [vmem:[%s1574_s4 + $0x610] sm:$0xff] }
 0x171   : > { %726 = vxpose.xlu2.b32.cont [11/16] %v352_v20, 128  ;;  %v353_v20 = vld [vmem:[%s1574_s4 + $0x4a8] sm:$0xff] }
 0x176   : > { %663 = vxpose.xlu0.b32.cont [12/16] %v322_v63, 128  ;;  %v514_v63 = vpop.trf.xlu1  ;;  %v578_v1 = vpop.trf.xlu0 }
 0x177   : > { %695 = vxpose.xlu1.b32.cont [12/16] (narrow) %v323_v0, 64  ;;  %1148 = vst [vmem:[%s1662_s15 + $0x580] sm:$0xff] %v514_v63  ;;  %v389_v63 = vld [vmem:[%s1574_s4 + $0x5c8] sm:$0xff] }
 0x178   : > { %1149 = vst [vmem:[%s1662_s15 + $0x588] sm:$0xff] %v578_v1 }
 0x179   : > { %727 = vxpose.xlu2.b32.cont [12/16] %v354_v25, 128 }
 0x17e   : > { %664 = vxpose.xlu0.b32.cont [13/16] %v324_v4, 128  ;;  %v555_v4 = vpop.trf.xlu2  ;;  %v515_v5 = vpop.trf.xlu1 }
 0x17f   : > { %1093 = vst [vmem:[%s1662_s15 + $0x3c8] sm:$0xff] %v555_v4  ;;  %v579_v7 = vpop.trf.xlu0  ;;  %696 = vxpose.xlu1.b32.cont [13/16] (narrow) %v325_v6, 64  ;;  %v400_v4 = vld [vmem:[%s1574_s4 + $0x620] sm:$0xff] }
 0x180   : > { %1156 = vst [vmem:[%s1662_s15 + $0x5c0] sm:$0xff] %v515_v5  ;;  %v391_v5 = vld [vmem:[%s1574_s4 + $0x5d8] sm:$0xff] }
 0x181   : > { %728 = vxpose.xlu2.b32.cont [13/16] %v356_v31, 128  ;;  %1157 = vst [vmem:[%s1662_s15 + $0x5c8] sm:$0xff] %v579_v7 }
 0x186   : > { %665 = vxpose.xlu0.b32.cont [14/16] %v326_v9, 128  ;;  %v371_v9 = vld [vmem:[%s1574_s4 + $0x538] sm:$0xff]  ;;  %v636_v10 = vpop.trf.xlu2  ;;  %v604_v11 = vpop.trf.xlu1 }
 0x187   : > { %1102 = vst [vmem:[%s1662_s15 + $0x410] sm:$0xff] %v636_v10  ;;  %697 = vxpose.xlu1.b32.cont [14/16] (narrow) %v327_v12, 64  ;;  %v402_v10 = vld [vmem:[%s1574_s4 + $0x630] sm:$0xff] }
 0x188   : > { %974 = vst [vmem:[%s1662_s15 + $0x10] sm:$0xff] %v604_v11  ;;  %v393_v11 = vld [vmem:[%s1574_s4 + $0x5e8] sm:$0xff] }
 0x189   : > { %729 = vxpose.xlu2.b32.cont [14/16] %v358_v37, 128 }
 0x18e   : > { %666 = vxpose.xlu0.b32.cont [15/16] %v328_v14, 128  ;;  %v351_v14 = vld [vmem:[%s1574_s4 + $0x498] sm:$0xff]  ;;  %v637_v16 = vpop.trf.xlu2  ;;  %v605_v17 = vpop.trf.xlu1 }
 0x18f   : > { %1110 = vst [vmem:[%s1662_s15 + $0x450] sm:$0xff] %v637_v16  ;;  %698 = vxpose.xlu1.b32.cont [15/16] (narrow) %v329_v18, 64  ;;  %v404_v16 = vld [vmem:[%s1574_s4 + $0x640] sm:$0xff] }
 0x190   : > { %982 = vst [vmem:[%s1662_s15 + $0x50] sm:$0xff] %v605_v17  ;;  %v395_v17 = vld [vmem:[%s1574_s4 + $0x5f8] sm:$0xff] }
 0x191   : > { %730 = vxpose.xlu2.b32.cont [15/16] %v360_v43, 128 }
 0x196   : > { %667 = vxpose.xlu0.b32.end [16/16] %v330_v19, 128  ;;  %v638_v22 = vpop.trf.xlu2  ;;  %v606_v23 = vpop.trf.xlu1 }
 0x197   : > { %1118 = vst [vmem:[%s1662_s15 + $0x490] sm:$0xff] %v638_v22  ;;  %v406_v22 = vld [vmem:[%s1574_s4 + $0x650] sm:$0xff] }
 0x198   : > { %990 = vst [vmem:[%s1662_s15 + $0x90] sm:$0xff] %v606_v23  ;;  %v428_v23 = vld [vmem:[%s1574_s4 + $0x700] sm:$0xff] }
 0x199   : > { %731 = vxpose.xlu2.b32.end [16/16] %v362_v49, 128 }
 0x19e   : > { %748 = vxpose.xlu0.b32.start [1/16] (narrow) %v333_v24, 64  ;;  %v331_v24 = vld [vmem:[%s1574_s4 + $0x3f8] sm:$0xff]  ;;  %v639_v28 = vpop.trf.xlu2  ;;  %v607_v29 = vpop.trf.xlu1 }
 0x19f   : > { %699 = vxpose.xlu1.b32.end [16/16] (narrow) %v331_v24, 64  ;;  %1126 = vst [vmem:[%s1662_s15 + $0x4d0] sm:$0xff] %v639_v28  ;;  %v408_v28 = vld [vmem:[%s1574_s4 + $0x660] sm:$0xff] }
 0x1a0   : > { %998 = vst [vmem:[%s1662_s15 + $0xd0] sm:$0xff] %v607_v29  ;;  %v430_v29 = vld [vmem:[%s1574_s4 + $0x710] sm:$0xff] }
 0x1a1   : > { %812 = vxpose.xlu2.b32.start [1/16] (narrow) %v365_v55, 64 }
 0x1a6   : > { %749 = vxpose.xlu0.b32.cont [2/16] (narrow) %v335_v30, 64  ;;  %v364_v30 = vld [vmem:[%s1574_s4 + $0x500] sm:$0xff]  ;;  %v640_v34 = vpop.trf.xlu2  ;;  %v608_v35 = vpop.trf.xlu1 }
 0x1a7   : > { %780 = vxpose.xlu1.b32.start [1/16] %v364_v30, 128  ;;  %1134 = vst [vmem:[%s1662_s15 + $0x510] sm:$0xff] %v640_v34  ;;  %v410_v34 = vld [vmem:[%s1574_s4 + $0x670] sm:$0xff] }
 0x1a8   : > { %1006 = vst [vmem:[%s1662_s15 + $0x110] sm:$0xff] %v608_v35  ;;  %v432_v35 = vld [vmem:[%s1574_s4 + $0x720] sm:$0xff] }
 0x1a9   : > { %813 = vxpose.xlu2.b32.cont [2/16] (narrow) %v367_v61, 64 }
 0x1ae   : > { %750 = vxpose.xlu0.b32.cont [3/16] (narrow) %v337_v36, 64  ;;  %v366_v36 = vld [vmem:[%s1574_s4 + $0x510] sm:$0xff]  ;;  %v641_v40 = vpop.trf.xlu2  ;;  %v609_v41 = vpop.trf.xlu1 }
 0x1af   : > { %781 = vxpose.xlu1.b32.cont [2/16] %v366_v36, 128  ;;  %1142 = vst [vmem:[%s1662_s15 + $0x550] sm:$0xff] %v641_v40  ;;  %v412_v40 = vld [vmem:[%s1574_s4 + $0x680] sm:$0xff] }
 0x1b0   : > { %1014 = vst [vmem:[%s1662_s15 + $0x150] sm:$0xff] %v609_v41  ;;  %v434_v41 = vld [vmem:[%s1574_s4 + $0x730] sm:$0xff] }
 0x1b1   : > { %814 = vxpose.xlu2.b32.cont [3/16] (narrow) %v369_v3, 64 }
 0x1b6   : > { %751 = vxpose.xlu0.b32.cont [4/16] (narrow) %v339_v42, 64  ;;  %v368_v42 = vld [vmem:[%s1574_s4 + $0x520] sm:$0xff]  ;;  %v642_v46 = vpop.trf.xlu2  ;;  %v610_v47 = vpop.trf.xlu1 }
 0x1b7   : > { %782 = vxpose.xlu1.b32.cont [3/16] %v368_v42, 128  ;;  %1150 = vst [vmem:[%s1662_s15 + $0x590] sm:$0xff] %v642_v46  ;;  %v414_v46 = vld [vmem:[%s1574_s4 + $0x690] sm:$0xff] }
 0x1b8   : > { %1022 = vst [vmem:[%s1662_s15 + $0x190] sm:$0xff] %v610_v47  ;;  %v436_v47 = vld [vmem:[%s1574_s4 + $0x740] sm:$0xff] }
 0x1b9   : > { %815 = vxpose.xlu2.b32.cont [4/16] (narrow) %v371_v9, 64 }
 0x1be   : > { %752 = vxpose.xlu0.b32.cont [5/16] (narrow) %v341_v48, 64  ;;  %v370_v48 = vld [vmem:[%s1574_s4 + $0x530] sm:$0xff]  ;;  %v643_v52 = vpop.trf.xlu2  ;;  %v611_v53 = vpop.trf.xlu1 }
 0x1bf   : > { %783 = vxpose.xlu1.b32.cont [4/16] %v370_v48, 128  ;;  %1158 = vst [vmem:[%s1662_s15 + $0x5d0] sm:$0xff] %v643_v52  ;;  %v416_v52 = vld [vmem:[%s1574_s4 + $0x6a0] sm:$0xff] }
 0x1c0   : > { %1030 = vst [vmem:[%s1662_s15 + $0x1d0] sm:$0xff] %v611_v53  ;;  %v438_v53 = vld [vmem:[%s1574_s4 + $0x750] sm:$0xff] }
 0x1c1   : > { %816 = vxpose.xlu2.b32.cont [5/16] (narrow) %v373_v15, 64 }
 0x1c2   : > { %v668_v13 = vpop.trf.xlu0 }
 0x1c3   : > { %975 = vst [vmem:[%s1662_s15 + $0x18] sm:$0xff] %v668_v13 }
 0x1c6   : > { %753 = vxpose.xlu0.b32.cont [6/16] (narrow) %v343_v54, 64  ;;  %v372_v54 = vld [vmem:[%s1574_s4 + $0x540] sm:$0xff]  ;;  %v732_v58 = vpop.trf.xlu2  ;;  %v612_v59 = vpop.trf.xlu1 }
 0x1c7   : > { %784 = vxpose.xlu1.b32.cont [5/16] %v372_v54, 128  ;;  %976 = vst [vmem:[%s1662_s15 + $0x20] sm:$0xff] %v732_v58  ;;  %v418_v58 = vld [vmem:[%s1574_s4 + $0x6b0] sm:$0xff] }
 0x1c8   : > { %1038 = vst [vmem:[%s1662_s15 + $0x210] sm:$0xff] %v612_v59  ;;  %v440_v59 = vld [vmem:[%s1574_s4 + $0x760] sm:$0xff] }
 0x1c9   : > { %817 = vxpose.xlu2.b32.cont [6/16] (narrow) %v375_v21, 64 }
 0x1ca   : > { %v669_v19 = vpop.trf.xlu0 }
 0x1cb   : > { %983 = vst [vmem:[%s1662_s15 + $0x58] sm:$0xff] %v669_v19 }
 0x1ce   : > { %754 = vxpose.xlu0.b32.cont [7/16] (narrow) %v345_v60, 64  ;;  %v374_v60 = vld [vmem:[%s1574_s4 + $0x550] sm:$0xff]  ;;  %v733_v0 = vpop.trf.xlu2  ;;  %v613_v1 = vpop.trf.xlu1 }
 0x1cf   : > { %785 = vxpose.xlu1.b32.cont [6/16] %v374_v60, 128  ;;  %984 = vst [vmem:[%s1662_s15 + $0x60] sm:$0xff] %v733_v0  ;;  %v420_v0 = vld [vmem:[%s1574_s4 + $0x6c0] sm:$0xff] }
 0x1d0   : > { %1046 = vst [vmem:[%s1662_s15 + $0x250] sm:$0xff] %v613_v1  ;;  %v442_v1 = vld [vmem:[%s1574_s4 + $0x770] sm:$0xff] }
 0x1d1   : > { %818 = vxpose.xlu2.b32.cont [7/16] (narrow) %v377_v27, 64 }
 0x1d2   : > { %v670_v25 = vpop.trf.xlu0 }
 0x1d3   : > { %991 = vst [vmem:[%s1662_s15 + $0x98] sm:$0xff] %v670_v25 }
 0x1d6   : > { %755 = vxpose.xlu0.b32.cont [8/16] (narrow) %v347_v2, 64  ;;  %v376_v2 = vld [vmem:[%s1574_s4 + $0x560] sm:$0xff]  ;;  %v734_v6 = vpop.trf.xlu2  ;;  %v614_v7 = vpop.trf.xlu1 }
 0x1d7   : > { %786 = vxpose.xlu1.b32.cont [7/16] %v376_v2, 128  ;;  %992 = vst [vmem:[%s1662_s15 + $0xa0] sm:$0xff] %v734_v6  ;;  %v422_v6 = vld [vmem:[%s1574_s4 + $0x6d0] sm:$0xff] }
 0x1d8   : > { %1054 = vst [vmem:[%s1662_s15 + $0x290] sm:$0xff] %v614_v7  ;;  %v444_v7 = vld [vmem:[%s1574_s4 + $0x780] sm:$0xff] }
 0x1d9   : > { %819 = vxpose.xlu2.b32.cont [8/16] (narrow) %v379_v33, 64 }
 0x1da   : > { %v671_v31 = vpop.trf.xlu0 }
 0x1db   : > { %999 = vst [vmem:[%s1662_s15 + $0xd8] sm:$0xff] %v671_v31 }
 0x1de   : > { %756 = vxpose.xlu0.b32.cont [9/16] (narrow) %v349_v8, 64  ;;  %v378_v8 = vld [vmem:[%s1574_s4 + $0x570] sm:$0xff]  ;;  %v735_v12 = vpop.trf.xlu2  ;;  %v615_v13 = vpop.trf.xlu1 }
 0x1df   : > { %787 = vxpose.xlu1.b32.cont [8/16] %v378_v8, 128  ;;  %1000 = vst [vmem:[%s1662_s15 + $0xe0] sm:$0xff] %v735_v12  ;;  %v424_v12 = vld [vmem:[%s1574_s4 + $0x6e0] sm:$0xff] }
 0x1e0   : > { %1062 = vst [vmem:[%s1662_s15 + $0x2d0] sm:$0xff] %v615_v13  ;;  %v446_v13 = vld [vmem:[%s1574_s4 + $0x790] sm:$0xff] }
 0x1e1   : > { %820 = vxpose.xlu2.b32.cont [9/16] (narrow) %v381_v39, 64 }
 0x1e2   : > { %v672_v37 = vpop.trf.xlu0 }
 0x1e3   : > { %1007 = vst [vmem:[%s1662_s15 + $0x118] sm:$0xff] %v672_v37 }
 0x1e6   : > { %757 = vxpose.xlu0.b32.cont [10/16] (narrow) %v351_v14, 64  ;;  %v380_v14 = vld [vmem:[%s1574_s4 + $0x580] sm:$0xff]  ;;  %v736_v18 = vpop.trf.xlu2  ;;  %v616_v19 = vpop.trf.xlu1 }
 0x1e7   : > { %788 = vxpose.xlu1.b32.cont [9/16] %v380_v14, 128  ;;  %1008 = vst [vmem:[%s1662_s15 + $0x120] sm:$0xff] %v736_v18  ;;  %v426_v18 = vld [vmem:[%s1574_s4 + $0x6f0] sm:$0xff] }
 0x1e8   : > { %1070 = vst [vmem:[%s1662_s15 + $0x310] sm:$0xff] %v616_v19  ;;  %v448_v19 = vld [vmem:[%s1574_s4 + $0x7a0] sm:$0xff] }
 0x1e9   : > { %821 = vxpose.xlu2.b32.cont [10/16] (narrow) %v383_v45, 64 }
 0x1ea   : > { %v673_v43 = vpop.trf.xlu0 }
 0x1eb   : > { %1015 = vst [vmem:[%s1662_s15 + $0x158] sm:$0xff] %v673_v43 }
 0x1ee   : > { %758 = vxpose.xlu0.b32.cont [11/16] (narrow) %v353_v20, 64  ;;  %v382_v20 = vld [vmem:[%s1574_s4 + $0x590] sm:$0xff]  ;;  %v737_v24 = vpop.trf.xlu2  ;;  %v617_v25 = vpop.trf.xlu1 }
 0x1ef   : > { %789 = vxpose.xlu1.b32.cont [10/16] %v382_v20, 128  ;;  %1016 = vst [vmem:[%s1662_s15 + $0x160] sm:$0xff] %v737_v24  ;;  %v429_v24 = vld [vmem:[%s1574_s4 + $0x708] sm:$0xff] }
 0x1f0   : > { %1078 = vst [vmem:[%s1662_s15 + $0x350] sm:$0xff] %v617_v25  ;;  %v450_v25 = vld [vmem:[%s1574_s4 + $0x7b0] sm:$0xff] }
 0x1f1   : > { %822 = vxpose.xlu2.b32.cont [11/16] (narrow) %v385_v51, 64 }
 0x1f2   : > { %v674_v49 = vpop.trf.xlu0 }
 0x1f3   : > { %1023 = vst [vmem:[%s1662_s15 + $0x198] sm:$0xff] %v674_v49 }
 0x1f6   : > { %759 = vxpose.xlu0.b32.cont [12/16] (narrow) %v355_v26, 64  ;;  %v384_v26 = vld [vmem:[%s1574_s4 + $0x5a0] sm:$0xff]  ;;  %v738_v30 = vpop.trf.xlu2  ;;  %v618_v31 = vpop.trf.xlu1 }
 0x1f7   : > { %790 = vxpose.xlu1.b32.cont [11/16] %v384_v26, 128  ;;  %1024 = vst [vmem:[%s1662_s15 + $0x1a0] sm:$0xff] %v738_v30  ;;  %v452_v30 = vld [vmem:[%s1574_s4 + $0x7c0] sm:$0xff] }
 0x1f8   : > { %1086 = vst [vmem:[%s1662_s15 + $0x390] sm:$0xff] %v618_v31 }
 0x1f9   : > { %823 = vxpose.xlu2.b32.cont [12/16] (narrow) %v387_v57, 64 }
 0x1fa   : > { %v675_v55 = vpop.trf.xlu0 }
 0x1fb   : > { %1031 = vst [vmem:[%s1662_s15 + $0x1d8] sm:$0xff] %v675_v55 }
 0x1fe   : > { %760 = vxpose.xlu0.b32.cont [13/16] (narrow) %v357_v32, 64  ;;  %v386_v32 = vld [vmem:[%s1574_s4 + $0x5b0] sm:$0xff]  ;;  %v739_v36 = vpop.trf.xlu2  ;;  %v619_v37 = vpop.trf.xlu1 }
 0x1ff   : > { %791 = vxpose.xlu1.b32.cont [12/16] %v386_v32, 128  ;;  %1032 = vst [vmem:[%s1662_s15 + $0x1e0] sm:$0xff] %v739_v36 }
 0x200   : > { %1094 = vst [vmem:[%s1662_s15 + $0x3d0] sm:$0xff] %v619_v37 }
 0x201   : > { %824 = vxpose.xlu2.b32.cont [13/16] (narrow) %v389_v63, 64 }
 0x202   : > { %v676_v61 = vpop.trf.xlu0 }
 0x203   : > { %1039 = vst [vmem:[%s1662_s15 + $0x218] sm:$0xff] %v676_v61 }
 0x206   : > { %761 = vxpose.xlu0.b32.cont [14/16] (narrow) %v359_v38, 64  ;;  %v388_v38 = vld [vmem:[%s1574_s4 + $0x5c0] sm:$0xff]  ;;  %v740_v42 = vpop.trf.xlu2  ;;  %v700_v43 = vpop.trf.xlu1 }
 0x207   : > { %792 = vxpose.xlu1.b32.cont [13/16] %v388_v38, 128  ;;  %1040 = vst [vmem:[%s1662_s15 + $0x220] sm:$0xff] %v740_v42  ;;  %v435_v38 = vld [vmem:[%s1574_s4 + $0x738] sm:$0xff] }
 0x208   : > { %1103 = vst [vmem:[%s1662_s15 + $0x418] sm:$0xff] %v700_v43  ;;  %v437_v43 = vld [vmem:[%s1574_s4 + $0x748] sm:$0xff] }
 0x209   : > { %825 = vxpose.xlu2.b32.cont [14/16] (narrow) %v391_v5, 64 }
 0x20a   : > { %v677_v3 = vpop.trf.xlu0 }
 0x20b   : > { %1047 = vst [vmem:[%s1662_s15 + $0x258] sm:$0xff] %v677_v3 }
 0x20e   : > { %762 = vxpose.xlu0.b32.cont [15/16] (narrow) %v361_v44, 64  ;;  %v390_v44 = vld [vmem:[%s1574_s4 + $0x5d0] sm:$0xff]  ;;  %v741_v48 = vpop.trf.xlu2  ;;  %v701_v49 = vpop.trf.xlu1 }
 0x20f   : > { %793 = vxpose.xlu1.b32.cont [14/16] %v390_v44, 128  ;;  %1048 = vst [vmem:[%s1662_s15 + $0x260] sm:$0xff] %v741_v48  ;;  %v413_v44 = vld [vmem:[%s1574_s4 + $0x688] sm:$0xff] }
 0x210   : > { %1111 = vst [vmem:[%s1662_s15 + $0x458] sm:$0xff] %v701_v49  ;;  %v439_v49 = vld [vmem:[%s1574_s4 + $0x758] sm:$0xff] }
 0x211   : > { %826 = vxpose.xlu2.b32.cont [15/16] (narrow) %v393_v11, 64 }
 0x212   : > { %v678_v9 = vpop.trf.xlu0 }
 0x213   : > { %1055 = vst [vmem:[%s1662_s15 + $0x298] sm:$0xff] %v678_v9 }
 0x216   : > { %763 = vxpose.xlu0.b32.end [16/16] (narrow) %v363_v50, 64  ;;  %v392_v50 = vld [vmem:[%s1574_s4 + $0x5e0] sm:$0xff]  ;;  %v742_v54 = vpop.trf.xlu2  ;;  %v702_v55 = vpop.trf.xlu1 }
 0x217   : > { %794 = vxpose.xlu1.b32.cont [15/16] %v392_v50, 128  ;;  %1056 = vst [vmem:[%s1662_s15 + $0x2a0] sm:$0xff] %v742_v54  ;;  %v415_v50 = vld [vmem:[%s1574_s4 + $0x698] sm:$0xff]  ;;  %v441_v54 = vld [vmem:[%s1574_s4 + $0x768] sm:$0xff] }
 0x218   : > { %1119 = vst [vmem:[%s1662_s15 + $0x498] sm:$0xff] %v702_v55  ;;  %v417_v55 = vld [vmem:[%s1574_s4 + $0x6a8] sm:$0xff] }
 0x219   : > { %827 = vxpose.xlu2.b32.end [16/16] (narrow) %v395_v17, 64 }
 0x21a   : > { %v679_v15 = vpop.trf.xlu0 }
 0x21b   : > { %1063 = vst [vmem:[%s1662_s15 + $0x2d8] sm:$0xff] %v679_v15 }
 0x21e   : > { %844 = vxpose.xlu0.b32.start [1/16] %v396_v56, 128  ;;  %v394_v56 = vld [vmem:[%s1574_s4 + $0x5f0] sm:$0xff]  ;;  %v743_v60 = vpop.trf.xlu2  ;;  %v703_v61 = vpop.trf.xlu1 }
 0x21f   : > { %795 = vxpose.xlu1.b32.end [16/16] %v394_v56, 128  ;;  %1064 = vst [vmem:[%s1662_s15 + $0x2e0] sm:$0xff] %v743_v60  ;;  %v419_v60 = vld [vmem:[%s1574_s4 + $0x6b8] sm:$0xff] }
 0x220   : > { %1127 = vst [vmem:[%s1662_s15 + $0x4d8] sm:$0xff] %v703_v61 }
 0x221   : > { %908 = vxpose.xlu2.b32.start [1/16] %v428_v23, 128 }
 0x222   : > { %v680_v21 = vpop.trf.xlu0 }
 0x223   : > { %1071 = vst [vmem:[%s1662_s15 + $0x318] sm:$0xff] %v680_v21 }
 0x226   : > { %845 = vxpose.xlu0.b32.cont [2/16] %v398_v62, 128  ;;  %v397_v62 = vld [vmem:[%s1574_s4 + $0x608] sm:$0xff]  ;;  %v744_v2 = vpop.trf.xlu2  ;;  %v704_v3 = vpop.trf.xlu1 }
 0x227   : > { %876 = vxpose.xlu1.b32.start [1/16] (narrow) %v397_v62, 64  ;;  %1072 = vst [vmem:[%s1662_s15 + $0x320] sm:$0xff] %v744_v2 }
 0x228   : > { %1135 = vst [vmem:[%s1662_s15 + $0x518] sm:$0xff] %v704_v3 }
 0x229   : > { %909 = vxpose.xlu2.b32.cont [2/16] %v430_v29, 128  ;;  %v407_v29 = vld [vmem:[%s1574_s4 + $0x658] sm:$0xff] }
 0x22a   : > { %v681_v27 = vpop.trf.xlu0 }
 0x22b   : > { %1079 = vst [vmem:[%s1662_s15 + $0x358] sm:$0xff] %v681_v27 }
 0x22e   : > { %846 = vxpose.xlu0.b32.cont [3/16] %v400_v4, 128  ;;  %v399_v4 = vld [vmem:[%s1574_s4 + $0x618] sm:$0xff]  ;;  %v745_v8 = vpop.trf.xlu2  ;;  %v705_v9 = vpop.trf.xlu1 }
 0x22f   : > { %877 = vxpose.xlu1.b32.cont [2/16] (narrow) %v399_v4, 64  ;;  %1080 = vst [vmem:[%s1662_s15 + $0x360] sm:$0xff] %v745_v8 }
 0x230   : > { %1143 = vst [vmem:[%s1662_s15 + $0x558] sm:$0xff] %v705_v9 }
 0x231   : > { %910 = vxpose.xlu2.b32.cont [3/16] %v432_v35, 128  ;;  %v454_v35 = vld [vmem:[%s1574_s4 + $0x7d0] sm:$0xff] }
 0x232   : > { %v682_v33 = vpop.trf.xlu0 }
 0x233   : > { %1087 = vst [vmem:[%s1662_s15 + $0x398] sm:$0xff] %v682_v33  ;;  %v433_v33 = vld [vmem:[%s1574_s4 + $0x728] sm:$0xff] }
 0x236   : > { %847 = vxpose.xlu0.b32.cont [4/16] %v402_v10, 128  ;;  %v401_v10 = vld [vmem:[%s1574_s4 + $0x628] sm:$0xff]  ;;  %v746_v14 = vpop.trf.xlu2  ;;  %v706_v15 = vpop.trf.xlu1 }
 0x237   : > { %878 = vxpose.xlu1.b32.cont [3/16] (narrow) %v401_v10, 64  ;;  %1088 = vst [vmem:[%s1662_s15 + $0x3a0] sm:$0xff] %v746_v14  ;;  %v449_v10 = vld [vmem:[%s1574_s4 + $0x7a8] sm:$0xff] }
 0x238   : > { %1151 = vst [vmem:[%s1662_s15 + $0x598] sm:$0xff] %v706_v15  ;;  %v451_v15 = vld [vmem:[%s1574_s4 + $0x7b8] sm:$0xff] }
 0x239   : > { %911 = vxpose.xlu2.b32.cont [4/16] %v434_v41, 128 }
 0x23a   : > { %v683_v39 = vpop.trf.xlu0 }
 0x23b   : > { %1095 = vst [vmem:[%s1662_s15 + $0x3d8] sm:$0xff] %v683_v39  ;;  %v411_v39 = vld [vmem:[%s1574_s4 + $0x678] sm:$0xff] }
 0x23e   : > { %848 = vxpose.xlu0.b32.cont [5/16] %v404_v16, 128  ;;  %v403_v16 = vld [vmem:[%s1574_s4 + $0x638] sm:$0xff]  ;;  %v747_v20 = vpop.trf.xlu2  ;;  %v707_v21 = vpop.trf.xlu1 }
 0x23f   : > { %879 = vxpose.xlu1.b32.cont [4/16] (narrow) %v403_v16, 64  ;;  %1096 = vst [vmem:[%s1662_s15 + $0x3e0] sm:$0xff] %v747_v20  ;;  %v427_v16 = vld [vmem:[%s1574_s4 + $0x6f8] sm:$0xff]  ;;  %v453_v20 = vld [vmem:[%s1574_s4 + $0x7c8] sm:$0xff] }
 0x240   : > { %1159 = vst [vmem:[%s1662_s15 + $0x5d8] sm:$0xff] %v707_v21 }
 0x241   : > { %912 = vxpose.xlu2.b32.cont [5/16] %v436_v47, 128 }
 0x242   : > { %v764_v45 = vpop.trf.xlu0 }
 0x243   : > { %1104 = vst [vmem:[%s1662_s15 + $0x420] sm:$0xff] %v764_v45  ;;  %v458_v45 = vld [vmem:[%s1574_s4 + $0x7f0] sm:$0xff] }
 0x246   : > { %849 = vxpose.xlu0.b32.cont [6/16] %v406_v22, 128  ;;  %v405_v22 = vld [vmem:[%s1574_s4 + $0x648] sm:$0xff]  ;;  %v828_v26 = vpop.trf.xlu2 }
 0x247   : > { %880 = vxpose.xlu1.b32.cont [5/16] (narrow) %v405_v22, 64  ;;  %1105 = vst [vmem:[%s1662_s15 + $0x428] sm:$0xff] %v828_v26 }
 0x249   : > { %913 = vxpose.xlu2.b32.cont [6/16] %v438_v53, 128 }
 0x24a   : > { %v765_v51 = vpop.trf.xlu0 }
 0x24b   : > { %1112 = vst [vmem:[%s1662_s15 + $0x460] sm:$0xff] %v765_v51  ;;  %v796_v27 = vpop.trf.xlu1 }
 0x24c   : > { %977 = vst [vmem:[%s1662_s15 + $0x28] sm:$0xff] %v796_v27 }
 0x24e   : > { %850 = vxpose.xlu0.b32.cont [7/16] %v408_v28, 128  ;;  %v431_v28 = vld [vmem:[%s1574_s4 + $0x718] sm:$0xff]  ;;  %v829_v31 = vpop.trf.xlu2 }
 0x24f   : > { %881 = vxpose.xlu1.b32.cont [6/16] (narrow) %v407_v29, 64  ;;  %1113 = vst [vmem:[%s1662_s15 + $0x468] sm:$0xff] %v829_v31 }
 0x251   : > { %914 = vxpose.xlu2.b32.cont [7/16] %v440_v59, 128  ;;  %v443_v59 = vld [vmem:[%s1574_s4 + $0x778] sm:$0xff] }
 0x252   : > { %v766_v57 = vpop.trf.xlu0 }
 0x253   : > { %1120 = vst [vmem:[%s1662_s15 + $0x4a0] sm:$0xff] %v766_v57  ;;  %v797_v32 = vpop.trf.xlu1 }
 0x254   : > { %985 = vst [vmem:[%s1662_s15 + $0x68] sm:$0xff] %v797_v32  ;;  %v459_v32 = vld [vmem:[%s1574_s4 + $0x7f8] sm:$0xff] }
 0x256   : > { %851 = vxpose.xlu0.b32.cont [8/16] %v410_v34, 128  ;;  %v409_v34 = vld [vmem:[%s1574_s4 + $0x668] sm:$0xff]  ;;  %v830_v36 = vpop.trf.xlu2 }
 0x257   : > { %882 = vxpose.xlu1.b32.cont [7/16] (narrow) %v409_v34, 64  ;;  %1121 = vst [vmem:[%s1662_s15 + $0x4a8] sm:$0xff] %v830_v36 }
 0x259   : > { %915 = vxpose.xlu2.b32.cont [8/16] %v442_v1, 128  ;;  %v421_v1 = vld [vmem:[%s1574_s4 + $0x6c8] sm:$0xff] }
 0x25a   : > { %v767_v63 = vpop.trf.xlu0 }
 0x25b   : > { %1128 = vst [vmem:[%s1662_s15 + $0x4e0] sm:$0xff] %v767_v63  ;;  %v798_v37 = vpop.trf.xlu1 }
 0x25c   : > { %993 = vst [vmem:[%s1662_s15 + $0xa8] sm:$0xff] %v798_v37 }
 0x25e   : > { %852 = vxpose.xlu0.b32.cont [9/16] %v412_v40, 128  ;;  %v456_v40 = vld [vmem:[%s1574_s4 + $0x7e0] sm:$0xff]  ;;  %v831_v41 = vpop.trf.xlu2 }
 0x25f   : > { %883 = vxpose.xlu1.b32.cont [8/16] (narrow) %v411_v39, 64  ;;  %1129 = vst [vmem:[%s1662_s15 + $0x4e8] sm:$0xff] %v831_v41 }
 0x261   : > { %916 = vxpose.xlu2.b32.cont [9/16] %v444_v7, 128 }
 0x262   : > { %v768_v5 = vpop.trf.xlu0 }
 0x263   : > { %1136 = vst [vmem:[%s1662_s15 + $0x520] sm:$0xff] %v768_v5  ;;  %v799_v42 = vpop.trf.xlu1  ;;  %v447_v5 = vld [vmem:[%s1574_s4 + $0x798] sm:$0xff] }
 0x264   : > { %1001 = vst [vmem:[%s1662_s15 + $0xe8] sm:$0xff] %v799_v42 }
 0x266   : > { %853 = vxpose.xlu0.b32.cont [10/16] %v414_v46, 128  ;;  %v832_v46 = vpop.trf.xlu2 }
 0x267   : > { %884 = vxpose.xlu1.b32.cont [9/16] (narrow) %v413_v44, 64  ;;  %1137 = vst [vmem:[%s1662_s15 + $0x528] sm:$0xff] %v832_v46 }
 0x269   : > { %917 = vxpose.xlu2.b32.cont [10/16] %v446_v13, 128 }
 0x26a   : > { %v769_v11 = vpop.trf.xlu0 }
 0x26b   : > { %1144 = vst [vmem:[%s1662_s15 + $0x560] sm:$0xff] %v769_v11  ;;  %v800_v47 = vpop.trf.xlu1  ;;  %v425_v11 = vld [vmem:[%s1574_s4 + $0x6e8] sm:$0xff] }
 0x26c   : > { %1009 = vst [vmem:[%s1662_s15 + $0x128] sm:$0xff] %v800_v47 }
 0x26e   : > { %854 = vxpose.xlu0.b32.cont [11/16] %v416_v52, 128  ;;  %v833_v51 = vpop.trf.xlu2 }
 0x26f   : > { %885 = vxpose.xlu1.b32.cont [10/16] (narrow) %v415_v50, 64  ;;  %1145 = vst [vmem:[%s1662_s15 + $0x568] sm:$0xff] %v833_v51 }
 0x271   : > { %918 = vxpose.xlu2.b32.cont [11/16] %v448_v19, 128 }
 0x272   : > { %v770_v17 = vpop.trf.xlu0 }
 0x273   : > { %1152 = vst [vmem:[%s1662_s15 + $0x5a0] sm:$0xff] %v770_v17  ;;  %v801_v52 = vpop.trf.xlu1 }
 0x274   : > { %1017 = vst [vmem:[%s1662_s15 + $0x168] sm:$0xff] %v801_v52 }
 0x276   : > { %855 = vxpose.xlu0.b32.cont [12/16] %v418_v58, 128  ;;  %v834_v56 = vpop.trf.xlu2 }
 0x277   : > { %886 = vxpose.xlu1.b32.cont [11/16] (narrow) %v417_v55, 64  ;;  %1153 = vst [vmem:[%s1662_s15 + $0x5a8] sm:$0xff] %v834_v56 }
 0x279   : > { %919 = vxpose.xlu2.b32.cont [12/16] %v450_v25, 128 }
 0x27a   : > { %v771_v23 = vpop.trf.xlu0 }
 0x27b   : > { %1160 = vst [vmem:[%s1662_s15 + $0x5e0] sm:$0xff] %v771_v23  ;;  %v802_v57 = vpop.trf.xlu1 }
 0x27c   : > { %1025 = vst [vmem:[%s1662_s15 + $0x1a8] sm:$0xff] %v802_v57 }
 0x27e   : > { %856 = vxpose.xlu0.b32.cont [13/16] %v420_v0, 128  ;;  %v835_v61 = vpop.trf.xlu2  ;;  %v445_v0 = vld [vmem:[%s1574_s4 + $0x788] sm:$0xff] }
 0x27f   : > { %887 = vxpose.xlu1.b32.cont [12/16] (narrow) %v419_v60, 64  ;;  %1161 = vst [vmem:[%s1662_s15 + $0x5e8] sm:$0xff] %v835_v61 }
 0x281   : > { %920 = vxpose.xlu2.b32.cont [13/16] %v452_v30, 128 }
 0x283   : > { %v803_v62 = vpop.trf.xlu1 }
 0x284   : > { %1033 = vst [vmem:[%s1662_s15 + $0x1e8] sm:$0xff] %v803_v62 }
 0x286   : > { %857 = vxpose.xlu0.b32.cont [14/16] %v422_v6, 128  ;;  %v423_v6 = vld [vmem:[%s1574_s4 + $0x6d8] sm:$0xff] }
 0x287   : > { %888 = vxpose.xlu1.b32.cont [13/16] (narrow) %v421_v1, 64 }
 0x289   : > { %921 = vxpose.xlu2.b32.cont [14/16] %v454_v35, 128 }
 0x28b   : > { %v804_v2 = vpop.trf.xlu1 }
 0x28c   : > { %1041 = vst [vmem:[%s1662_s15 + $0x228] sm:$0xff] %v804_v2 }
 0x28e   : > { %858 = vxpose.xlu0.b32.cont [15/16] %v424_v12, 128 }
 0x28f   : > { %889 = vxpose.xlu1.b32.cont [14/16] (narrow) %v423_v6, 64 }
 0x291   : > { %922 = vxpose.xlu2.b32.cont [15/16] %v456_v40, 128 }
 0x293   : > { %v805_v7 = vpop.trf.xlu1 }
 0x294   : > { %1049 = vst [vmem:[%s1662_s15 + $0x268] sm:$0xff] %v805_v7 }
 0x296   : > { %859 = vxpose.xlu0.b32.end [16/16] %v426_v18, 128 }
 0x297   : > { %890 = vxpose.xlu1.b32.cont [15/16] (narrow) %v425_v11, 64 }
 0x299   : > { %923 = vxpose.xlu2.b32.end [16/16] %v458_v45, 128 }
 0x29b   : > { %v806_v12 = vpop.trf.xlu1 }
 0x29c   : > { %1057 = vst [vmem:[%s1662_s15 + $0x2a8] sm:$0xff] %v806_v12 }
 0x29e   : > { %940 = vxpose.xlu0.b32.start [1/16] (narrow) %v429_v24, 64  ;;  %v455_v24 = vld [vmem:[%s1574_s4 + $0x7d8] sm:$0xff] }
 0x29f   : > { %891 = vxpose.xlu1.b32.end [16/16] (narrow) %v427_v16, 64 }
 0x2a3   : > { %v807_v17 = vpop.trf.xlu1 }
 0x2a4   : > { %1065 = vst [vmem:[%s1662_s15 + $0x2e8] sm:$0xff] %v807_v17 }
 0x2a6   : > { %941 = vxpose.xlu0.b32.cont [2/16] (narrow) %v431_v28, 64  ;;  %v457_v28 = vld [vmem:[%s1574_s4 + $0x7e8] sm:$0xff] }
 0x2ab   : > { %v808_v21 = vpop.trf.xlu1 }
 0x2ac   : > { %1073 = vst [vmem:[%s1662_s15 + $0x328] sm:$0xff] %v808_v21 }
 0x2ae   : > { %942 = vxpose.xlu0.b32.cont [3/16] (narrow) %v433_v33, 64 }
 0x2b3   : > { %v809_v25 = vpop.trf.xlu1 }
 0x2b4   : > { %1081 = vst [vmem:[%s1662_s15 + $0x368] sm:$0xff] %v809_v25 }
 0x2b6   : > { %943 = vxpose.xlu0.b32.cont [4/16] (narrow) %v435_v38, 64 }
 0x2ba   : > { %v924_v3 = vpop.trf.xlu2 }
 0x2bb   : > { %979 = vst [vmem:[%s1662_s15 + $0x38] sm:$0xff] %v924_v3  ;;  %v810_v29 = vpop.trf.xlu1 }
 0x2bc   : > { %1089 = vst [vmem:[%s1662_s15 + $0x3a8] sm:$0xff] %v810_v29 }
 0x2be   : > { %944 = vxpose.xlu0.b32.cont [5/16] (narrow) %v437_v43, 64 }
 0x2c2   : > { %v860_v48 = vpop.trf.xlu0  ;;  %v925_v8 = vpop.trf.xlu2 }
 0x2c3   : > { %978 = vst [vmem:[%s1662_s15 + $0x30] sm:$0xff] %v860_v48  ;;  %v811_v33 = vpop.trf.xlu1 }
 0x2c4   : > { %987 = vst [vmem:[%s1662_s15 + $0x78] sm:$0xff] %v925_v8 }
 0x2c5   : > { %1097 = vst [vmem:[%s1662_s15 + $0x3e8] sm:$0xff] %v811_v33 }
 0x2c6   : > { %945 = vxpose.xlu0.b32.cont [6/16] (narrow) %v439_v49, 64 }
 0x2ca   : > { %v861_v53 = vpop.trf.xlu0  ;;  %v926_v13 = vpop.trf.xlu2 }
 0x2cb   : > { %986 = vst [vmem:[%s1662_s15 + $0x70] sm:$0xff] %v861_v53  ;;  %v892_v37 = vpop.trf.xlu1 }
 0x2cc   : > { %995 = vst [vmem:[%s1662_s15 + $0xb8] sm:$0xff] %v926_v13 }
 0x2cd   : > { %1106 = vst [vmem:[%s1662_s15 + $0x430] sm:$0xff] %v892_v37 }
 0x2ce   : > { %946 = vxpose.xlu0.b32.cont [7/16] (narrow) %v441_v54, 64 }
 0x2d2   : > { %v862_v58 = vpop.trf.xlu0  ;;  %v927_v18 = vpop.trf.xlu2 }
 0x2d3   : > { %994 = vst [vmem:[%s1662_s15 + $0xb0] sm:$0xff] %v862_v58  ;;  %v893_v40 = vpop.trf.xlu1 }
 0x2d4   : > { %1003 = vst [vmem:[%s1662_s15 + $0xf8] sm:$0xff] %v927_v18 }
 0x2d5   : > { %1114 = vst [vmem:[%s1662_s15 + $0x470] sm:$0xff] %v893_v40 }
 0x2d6   : > { %947 = vxpose.xlu0.b32.cont [8/16] (narrow) %v443_v59, 64 }
 0x2da   : > { %v863_v63 = vpop.trf.xlu0  ;;  %v928_v22 = vpop.trf.xlu2 }
 0x2db   : > { %1002 = vst [vmem:[%s1662_s15 + $0xf0] sm:$0xff] %v863_v63  ;;  %v894_v43 = vpop.trf.xlu1 }
 0x2dc   : > { %1011 = vst [vmem:[%s1662_s15 + $0x138] sm:$0xff] %v928_v22 }
 0x2dd   : > { %1122 = vst [vmem:[%s1662_s15 + $0x4b0] sm:$0xff] %v894_v43 }
 0x2de   : > { %948 = vxpose.xlu0.b32.cont [9/16] (narrow) %v445_v0, 64 }
 0x2e2   : > { %v864_v4 = vpop.trf.xlu0  ;;  %v929_v26 = vpop.trf.xlu2 }
 0x2e3   : > { %1010 = vst [vmem:[%s1662_s15 + $0x130] sm:$0xff] %v864_v4  ;;  %v895_v46 = vpop.trf.xlu1 }
 0x2e4   : > { %1019 = vst [vmem:[%s1662_s15 + $0x178] sm:$0xff] %v929_v26 }
 0x2e5   : > { %1130 = vst [vmem:[%s1662_s15 + $0x4f0] sm:$0xff] %v895_v46 }
 0x2e6   : > { %949 = vxpose.xlu0.b32.cont [10/16] (narrow) %v447_v5, 64 }
 0x2ea   : > { %v865_v9 = vpop.trf.xlu0  ;;  %v930_v30 = vpop.trf.xlu2 }
 0x2eb   : > { %1018 = vst [vmem:[%s1662_s15 + $0x170] sm:$0xff] %v865_v9  ;;  %v896_v49 = vpop.trf.xlu1 }
 0x2ec   : > { %1027 = vst [vmem:[%s1662_s15 + $0x1b8] sm:$0xff] %v930_v30 }
 0x2ed   : > { %1138 = vst [vmem:[%s1662_s15 + $0x530] sm:$0xff] %v896_v49 }
 0x2ee   : > { %950 = vxpose.xlu0.b32.cont [11/16] (narrow) %v449_v10, 64 }
 0x2f2   : > { %v866_v14 = vpop.trf.xlu0  ;;  %v931_v34 = vpop.trf.xlu2 }
 0x2f3   : > { %1026 = vst [vmem:[%s1662_s15 + $0x1b0] sm:$0xff] %v866_v14  ;;  %v897_v52 = vpop.trf.xlu1 }
 0x2f4   : > { %1035 = vst [vmem:[%s1662_s15 + $0x1f8] sm:$0xff] %v931_v34 }
 0x2f5   : > { %1146 = vst [vmem:[%s1662_s15 + $0x570] sm:$0xff] %v897_v52 }
 0x2f6   : > { %951 = vxpose.xlu0.b32.cont [12/16] (narrow) %v451_v15, 64 }
 0x2fa   : > { %v867_v19 = vpop.trf.xlu0  ;;  %v932_v36 = vpop.trf.xlu2 }
 0x2fb   : > { %1034 = vst [vmem:[%s1662_s15 + $0x1f0] sm:$0xff] %v867_v19  ;;  %v898_v55 = vpop.trf.xlu1 }
 0x2fc   : > { %1043 = vst [vmem:[%s1662_s15 + $0x238] sm:$0xff] %v932_v36 }
 0x2fd   : > { %1154 = vst [vmem:[%s1662_s15 + $0x5b0] sm:$0xff] %v898_v55 }
 0x2fe   : > { %952 = vxpose.xlu0.b32.cont [13/16] (narrow) %v453_v20, 64 }
 0x302   : > { %v868_v23 = vpop.trf.xlu0  ;;  %v933_v39 = vpop.trf.xlu2 }
 0x303   : > { %1042 = vst [vmem:[%s1662_s15 + $0x230] sm:$0xff] %v868_v23  ;;  %v899_v58 = vpop.trf.xlu1 }
 0x304   : > { %1051 = vst [vmem:[%s1662_s15 + $0x278] sm:$0xff] %v933_v39 }
 0x305   : > { %1162 = vst [vmem:[%s1662_s15 + $0x5f0] sm:$0xff] %v899_v58 }
 0x306   : > { %953 = vxpose.xlu0.b32.cont [14/16] (narrow) %v455_v24, 64 }
 0x30a   : > { %v869_v27 = vpop.trf.xlu0  ;;  %v934_v42 = vpop.trf.xlu2 }
 0x30b   : > { %1050 = vst [vmem:[%s1662_s15 + $0x270] sm:$0xff] %v869_v27 }
 0x30c   : > { %1059 = vst [vmem:[%s1662_s15 + $0x2b8] sm:$0xff] %v934_v42 }
 0x30e   : > { %954 = vxpose.xlu0.b32.cont [15/16] (narrow) %v457_v28, 64 }
 0x312   : > { %v870_v31 = vpop.trf.xlu0  ;;  %v935_v45 = vpop.trf.xlu2 }
 0x313   : > { %1058 = vst [vmem:[%s1662_s15 + $0x2b0] sm:$0xff] %v870_v31 }
 0x314   : > { %1067 = vst [vmem:[%s1662_s15 + $0x2f8] sm:$0xff] %v935_v45 }
 0x316   : > { %955 = vxpose.xlu0.b32.end [16/16] (narrow) %v459_v32, 64 }
 0x31a   : > { %v871_v35 = vpop.trf.xlu0  ;;  %v936_v48 = vpop.trf.xlu2 }
 0x31b   : > { %1066 = vst [vmem:[%s1662_s15 + $0x2f0] sm:$0xff] %v871_v35 }
 0x31c   : > { %1075 = vst [vmem:[%s1662_s15 + $0x338] sm:$0xff] %v936_v48 }
 0x322   : > { %v872_v38 = vpop.trf.xlu0  ;;  %v937_v51 = vpop.trf.xlu2 }
 0x323   : > { %1074 = vst [vmem:[%s1662_s15 + $0x330] sm:$0xff] %v872_v38 }
 0x324   : > { %1083 = vst [vmem:[%s1662_s15 + $0x378] sm:$0xff] %v937_v51 }
 0x32a   : > { %v873_v41 = vpop.trf.xlu0  ;;  %v938_v54 = vpop.trf.xlu2 }
 0x32b   : > { %1082 = vst [vmem:[%s1662_s15 + $0x370] sm:$0xff] %v873_v41 }
 0x32c   : > { %1091 = vst [vmem:[%s1662_s15 + $0x3b8] sm:$0xff] %v938_v54 }
 0x332   : > { %v874_v44 = vpop.trf.xlu0  ;;  %v939_v57 = vpop.trf.xlu2 }
 0x333   : > { %1090 = vst [vmem:[%s1662_s15 + $0x3b0] sm:$0xff] %v874_v44 }
 0x334   : > { %1099 = vst [vmem:[%s1662_s15 + $0x3f8] sm:$0xff] %v939_v57 }
 0x33a   : > { %v875_v47 = vpop.trf.xlu0 }
 0x33b   : > { %1098 = vst [vmem:[%s1662_s15 + $0x3f0] sm:$0xff] %v875_v47 }
 0x342   : > { %v956_v50 = vpop.trf.xlu0 }
 0x343   : > { %1107 = vst [vmem:[%s1662_s15 + $0x438] sm:$0xff] %v956_v50 }
 0x34a   : > { %v957_v53 = vpop.trf.xlu0 }
 0x34b   : > { %1115 = vst [vmem:[%s1662_s15 + $0x478] sm:$0xff] %v957_v53 }
 0x352   : > { %v958_v56 = vpop.trf.xlu0 }
 0x353   : > { %1123 = vst [vmem:[%s1662_s15 + $0x4b8] sm:$0xff] %v958_v56 }
 0x35a   : > { %v959_v59 = vpop.trf.xlu0 }
 0x35b   : > { %1131 = vst [vmem:[%s1662_s15 + $0x4f8] sm:$0xff] %v959_v59 }
 0x362   : > { %v960_v60 = vpop.trf.xlu0 }
 0x363   : > { %1139 = vst [vmem:[%s1662_s15 + $0x538] sm:$0xff] %v960_v60 }
 0x36a   : > { %v961_v61 = vpop.trf.xlu0 }
 0x36b   : > { %1147 = vst [vmem:[%s1662_s15 + $0x578] sm:$0xff] %v961_v61 }
 0x372   : > { %v962_v62 = vpop.trf.xlu0 }
 0x373   : > { %1155 = vst [vmem:[%s1662_s15 + $0x5b8] sm:$0xff] %v962_v62 }
 0x377   : > { %1171 = sbr.rel (!%p1548_p3) target bundleno = 929 (0x3a1), region = 28 }
 0x37a   : > { %v963_v63 = vpop.trf.xlu0 }
 0x37b   : > { %1163 = vst [vmem:[%s1662_s15 + $0x5f8] sm:$0xff] %v963_v63 }
 0x37c   : > { %s2128_s22 = smov (!%p1175_p0, %s1174_s22), 8 }
 0x37d   : > { %s1177_s23 = smul.u32 192, %s2128_s22 }
 0x37f   : > { %s1178_s25 = ssub.s32 1536, %s1177_s23 }
 0x380   : > { %s1179_s26 = sshll.u32 %s1178_s25, 4 }
 0x381   : > { %1180 = vsyncadd %s2031_s18, %s1179_s26  ;;  %p2040_p1 = scmp.ne.s32.totalorder %s1177_s23, 0  ;;  %s1304_s19 = smul.u32 240, %s1470_s10 }
 0x382   : > { %s1297_s28 = sshll.u32 %s2128_s22, 3  ;;  %s1190_s9 = sshll.u32 %s1662_s15, 4  ;;  %s2047_s9 = int_to_ptr.vmem [resolvable:$true] %s1190_s9 }
 0x383   : > { %s1185_s29 = sadd.s32 %s1304_s19, %s1294_s21  ;;  %s2050_s2 = smul.u32 3072, %s2128_s22 }
 0x384   : > { %s1296_s30 = sshll.u32 %s1185_s29, 3  ;;  %s1377_s10 = sshra.s32 %s2047_s9, 4  ;;  %s1378_s10 = int_to_ptr.vmem [resolvable:$true] %s1377_s10 }
 0x385   : > { %s1187_s5 = scalar_lea.hbm %s2108_s1, %s1296_s30  ;;  %s1379_s15 = sshrl.u32 %s2050_s2, 4 }
 0x386   : > { %s1192_s14 = sshll.u32 %s1187_s5, 4  ;;  %s1415_s21 = sshll.u32 %s1379_s15, 4  ;;  %s2055_s14 = int_to_ptr.hbm [resolvable:$true] %s1192_s14 }
 0x387   : > { %p1381_p2 = scmp.ne.s32.totalorder %s1415_s21, %s2050_s2  ;;  %s1382_s23 = sadd.s32 1, %s1379_s15 }
 0x388   : > { %s1484_s26 = smov [#allocation2]  }
 0x389   : > { %s2130_s23 = smov (!%p1381_p2, %s1382_s23), %s1379_s15  ;;  %s1388_s19 = scalar_lea.vmem %s1484_s26, 3072 }
 0x38a   : > { %s1384_s25 = scalar_lea.vmem %s1378_s10, %s2130_s23 }
 0x38b   : > { %p1385_p3 = scmp.ne.s32.totalorder %s1378_s10, %s1384_s25  ;;  %p1390_p6 = scmp.lt.s32.totalorder %s1388_s19, %s1384_s25 }
 0x38d   : > { %p1386_p4 = pnand %p1385_p3, %p2040_p1 }
 0x38f   : > { %p1387_p5 = pneg %p1386_p4 }
 0x391   : > { %p1392_p7 = pnand %p1390_p6, %p1387_p5 }
 0x393   : > { %1395 = shalt.err (!%p1392_p7)
}
 0x394   : > { %s1396_s29 = sshra.s32 %s2055_s14, 4  ;;  %s1407_s5 = scalar_lea.hbm %s2108_s1, 3840  ;;  %s1397_s29 = int_to_ptr.hbm [resolvable:$true] %s1396_s29 }
 0x395   : > { %s1403_s30 = scalar_lea.hbm %s1397_s29, %s2130_s23  ;;  %p1408_p12 = scmp.lt.s32.totalorder %s1397_s29, %s2108_s1 }
 0x396   : > { %p1404_p9 = scmp.ne.s32.totalorder %s1397_s29, %s1403_s30  ;;  %p1409_p13 = scmp.lt.s32.totalorder %s1407_s5, %s1403_s30 }
 0x398   : > { %p1405_p10 = pnand %p1404_p9, %p2040_p1  ;;  %p1410_p0 = por %p1409_p13, %p1408_p12 }
 0x39a   : > { %p1406_p11 = pneg %p1405_p10 }
 0x39c   : > { %p1411_p2 = pnand %p1410_p0, %p1406_p11 }
 0x39e   : > { %1414 = shalt.err (!%p1411_p2)
}
 0x39f   : > { %s1485_s21 = smov 1024   ;;  %s1486_s23 = smov 1280  }
 0x3a0   : > { %1198 = dma.vmem_to_hbm [thread:$0]  (%p2040_p1), %s2047_s9, %s2050_s2, %s2055_s14, %s2031_s18, %s1485_s21, %s1486_s23, %s1297_s28  }
 0x3a1 PF: > { %p1310_p3 = scmp.ge.s32.totalorder %s1482_s13, 2  ;;  %s1207_s25 = sand.u32 1, %s1454_s6  }
 0x3a2   : > { %s1208_s26 = scalar_lea.sflag [#allocation3], %s1207_s25 }
 0x3a3   : > { %p1307_p4 = pnand %p1310_p3, %p1557_p8 }
 0x3a5   : > { %p1308_p5 = pneg %p1307_p4 }
 0x3a7   : > { %1449 = dma.done.wait (%p1308_p5), %s1208_s26, 24576  }
 0x3a8   : > { %1451 = vsyncadd (%p1308_p5), %s1208_s26, 4294942720  ;;  %s14_s13 = sadd.s32 1, %s1482_s13   ;;  %s2112_s6 = smov %s1458_s7 }
 0x3a9   : > { %p11_p6 = scmp.ge.s32.totalorder %s14_s13, 6   ;;  %s2113_s7 = smov %s1462_s8 }
 0x3aa   : > { %s2114_s8 = smov %s1566_s24  ;;  %s2115_s9 = smov %s1474_s11 }
 0x3ab   : > { %s2116_s10 = smov %s1478_s12  ;;  %s2117_s11 = smov %s2120_s16 }
 0x3ac   : > { %s2118_s12 = smov %s2124_s17  ;;  %13 = sbr.rel (!%p11_p6) target bundleno = 5 (0x5), region = 59 }
 0x3b1   :  { %1214 = vsyncpa [#allocation3], 1 }
 0x3b2   :  { %1216 = vsyncpa [#allocation3 + $0x1], 1 }

</bundles_post_ra>
